<compile_context>
chip_gen: v6e
topology: v6e:2x2x1
jax: 0.10.0
libtpu: 0.0.40
codegen_flags: <defaults>
</compile_context>

<pallas_src>
import jax
import jax.numpy as jnp
from jax import lax
from jax.experimental import pallas as pl
from jax.experimental.pallas import tpu as pltpu


def _lddt_kernel(fa_ref, fb_ref, ti_ref, tj_ref, z_ref,
                 wz_ref, bz_ref, w5_ref, b5_ref, wl_ref, bl_ref,
                 out_ref):
    f32 = jnp.float32
    bf16 = jnp.bfloat16
    TI, TJ, Zd = z_ref.shape
    N = TI * TJ

    # zs_from_s[i, j, :] = feat_a[j, :] + feat_b[i, :]   (residual stream, f32)
    fa = fa_ref[...].astype(f32)                              # (TJ, Z)
    fb = fb_ref[...].astype(f32)                              # (TI, Z)
    fa_b = lax.broadcast_in_dim(fa, (TI, TJ, Zd), (1, 2))
    fb_b = lax.broadcast_in_dim(fb, (TI, TJ, Zd), (0, 2))
    zs_from_s = (fa_b + fb_b).reshape(N, Zd)

    w2, w3, w4 = wz_ref[0], wz_ref[1], wz_ref[2]              # bf16 (Z, Z)
    w6, w7, w8 = wz_ref[3], wz_ref[4], wz_ref[5]
    b2, b3, b4 = bz_ref[0:1, :], bz_ref[1:2, :], bz_ref[2:3, :]   # f32 (1, Z)
    b6, b7, b8 = bz_ref[3:4, :], bz_ref[4:5, :], bz_ref[5:6, :]

    # Pair-representation branch: bf16 MXU operands, f32 accumulation.
    z_bf = z_ref[...].reshape(N, Zd).astype(bf16)
    zc = zs_from_s + jnp.dot(z_bf, w2, preferred_element_type=f32) + b2
    h1 = jnp.maximum(zc, 0.0).astype(bf16)
    h1 = jnp.maximum(jnp.dot(h1, w3, preferred_element_type=f32) + b3, 0.0)
    zs = zs_from_s + jnp.dot(h1.astype(bf16), w4, preferred_element_type=f32) + b4

    # Spatial branch: rel[i,j,:] = relu(trans[i] - trans[j]).  The K=3
    # contraction with W5 is done on the VPU as 3 rank-1 updates (no MXU pass).
    t_i = ti_ref[...].astype(f32)                             # (TI, 3)
    t_j = tj_ref[...].astype(f32)                             # (TJ, 3)
    ti_b = lax.broadcast_in_dim(t_i, (TI, TJ, 3), (0, 2))
    tj_b = lax.broadcast_in_dim(t_j, (TI, TJ, 3), (1, 2))
    rel = jnp.maximum(ti_b - tj_b, 0.0).reshape(N, 3)
    w5 = w5_ref[...].astype(f32)                              # (3, Z)
    sp = (b5_ref[...].astype(f32)
          + rel[:, 0:1] * w5[0:1, :]
          + rel[:, 1:2] * w5[1:2, :]
          + rel[:, 2:3] * w5[2:3, :])
    sp = jnp.maximum(sp, 0.0)
    zs = zs + jnp.dot(sp.astype(bf16), w6, preferred_element_type=f32) + b6

    # Second pair MLP.
    h2 = jnp.maximum(zs, 0.0).astype(bf16)
    h2 = jnp.maximum(jnp.dot(h2, w7, preferred_element_type=f32) + b7, 0.0)
    zs = zs + jnp.dot(h2.astype(bf16), w8, preferred_element_type=f32) + b8

    logits = (jnp.dot(zs.astype(bf16), wl_ref[...], preferred_element_type=f32)
              + bl_ref[...].astype(f32))                      # (N, 5)

    # log_softmax over the 5-class axis (f32).
    m = jnp.max(logits, axis=-1, keepdims=True)
    shifted = logits - m
    lse = jnp.log(jnp.sum(jnp.exp(shifted), axis=-1, keepdims=True))
    out = shifted - lse

    if out_ref.ndim == 2:
        # lane-dense (TI, TJ*5) output slab -> unmasked dense stores / DMA.
        out_ref[...] = out.reshape(TI, TJ * 5).astype(out_ref.dtype)
    else:
        # (TI, TJ, 5) fallback layout.
        out_ref[...] = out.reshape(TI, TJ, 5).astype(out_ref.dtype)


def _device_kind():
    try:
        return jax.devices()[0].device_kind.lower()
    except Exception:
        return ""


def _vmem_limit_bytes(kind):
    if "v7" in kind:
        return 44 * 1024 * 1024          # v7x: 64 MiB physical per TC
    if any(t in kind for t in ("v4", "v5", "v6")):
        return 80 * 1024 * 1024          # 128 MiB physical
    return None                          # unknown part: leave the default


def lddt_predictor_forward(rot, trans, s, z, params):
    """Fused Pallas forward. rot is unused (matches the PyTorch module)."""
    del rot
    L, s_dim = s.shape
    z_dim = params["wz"].shape[-1]
    assert z.shape == (L, L, z_dim)
    assert trans.shape == (L, 3)

    f32 = jnp.float32
    bf16 = jnp.bfloat16
    hp = jax.lax.Precision.HIGHEST

    # Tiny per-residue projections done once here instead of per grid step.
    feat_a = (jnp.dot(s.astype(f32), params["ws"][0].astype(f32), precision=hp)
              + params["bs"][0:1].astype(f32))                # (L, Z)
    feat_b = (jnp.dot(s.astype(f32), params["ws"][1].astype(f32), precision=hp)
              + params["bs"][1:2].astype(f32))                # (L, Z)
    trans_f = trans.astype(f32)                               # (L, 3)

    # bf16 MXU operands; biases / small VPU weights stay f32.
    wz_bf = params["wz"].astype(bf16)                         # (6, Z, Z)
    wl_bf = params["wl"].astype(bf16)                         # (Z, 5)
    bz_f = params["bz"].astype(f32)                           # (6, Z)
    w5_f = params["w5"].astype(f32)                           # (3, Z)
    b5_f = params["b5"].astype(f32)                           # (1, Z)
    bl_f = params["bl"].astype(f32)                           # (1, 5)

    # --- tiling of the (L, L) pair grid ---------------------------------
    kind = _device_kind()
    is_v7 = "v7" in kind
    if L <= 128:
        TJ = L
        # split the i axis into >=2 blocks when possible so both TensorCores
        # (v7x) get work; harmless elsewhere.
        TI = L if L < 16 else max(8, ((L // 2) // 8) * 8)
    else:
        TJ = 128
        TI = 32 if is_v7 else 64          # v5e/v6e have 128 MiB VMEM -> bigger tile
    grid = (pl.cdiv(L, TI), pl.cdiv(L, TJ))

    cp_kwargs = dict(dimension_semantics=("parallel", "parallel"))
    vmem_limit = _vmem_limit_bytes(kind)
    if vmem_limit is not None:
        cp_kwargs["vmem_limit_bytes"] = vmem_limit
    compiler_params = pltpu.CompilerParams(**cp_kwargs)

    n_pairs = L * L
    cost = pl.CostEstimate(
        flops=int(2 * n_pairs * z_dim * (6 * z_dim + 5) + 40 * n_pairs * z_dim),
        transcendentals=int(6 * n_pairs),
        bytes_accessed=int(z.size * z.dtype.itemsize
                           + n_pairs * 5 * 4
                           + 2 * L * z_dim * 4 + 2 * L * 3 * 4
                           + 6 * z_dim * z_dim * 2 + z_dim * 5 * 2
                           + 8 * z_dim * 4),
    )

    def _const_spec(shape, single_buffer):
        zeros = (0,) * len(shape)
        idx = lambda i, j: zeros
        if single_buffer:
            return pl.BlockSpec(shape, idx, pipeline_mode=pl.Buffered(1))
        return pl.BlockSpec(shape, idx)

    def _run(optimized):
        in_specs = [
            pl.BlockSpec((TJ, z_dim), lambda i, j: (j, 0)),          # feat_a (j rows)
            pl.BlockSpec((TI, z_dim), lambda i, j: (i, 0)),          # feat_b (i rows)
            pl.BlockSpec((TI, 3), lambda i, j: (i, 0)),              # trans (i rows)
            pl.BlockSpec((TJ, 3), lambda i, j: (j, 0)),              # trans (j rows)
            pl.BlockSpec((TI, TJ, z_dim), lambda i, j: (i, j, 0)),   # z tile (native dtype)
            _const_spec(wz_bf.shape, optimized),
            _const_spec(bz_f.shape, optimized),
            _const_spec(w5_f.shape, optimized),
            _const_spec(b5_f.shape, optimized),
            _const_spec(wl_bf.shape, optimized),
            _const_spec(bl_f.shape, optimized),
        ]
        if optimized:
            out_shape = jax.ShapeDtypeStruct((L, L * 5), jnp.float32)
            out_spec = pl.BlockSpec((TI, TJ * 5), lambda i, j: (i, j))
        else:
            out_shape = jax.ShapeDtypeStruct((L, L, 5), jnp.float32)
            out_spec = pl.BlockSpec((TI, TJ, 5), lambda i, j: (i, j, 0))

        out = pl.pallas_call(
            _lddt_kernel,
            out_shape=out_shape,
            grid_spec=pltpu.PrefetchScalarGridSpec(
                num_scalar_prefetch=0,
                grid=grid,
                in_specs=in_specs,
                out_specs=out_spec,
            ),
            compiler_params=compiler_params,
            cost_estimate=cost,
        )(feat_a, feat_b, trans_f, trans_f, z,
          wz_bf, bz_f, w5_f, b5_f, wl_bf, bl_f)
        jax.block_until_ready(out)
        return out.reshape(L, L, 5) if optimized else out

    # Optimized configuration (single-buffered constants + lane-dense output)
    # with a guaranteed-safe fallback if either fails to lower on this jaxlib.
    try:
        return _run(True)
    except Exception:
        return _run(False)


def lddt_predictor_ref(rot, trans, s, z, p):
    """Pure-JAX reference (high-precision dots) for verification."""
    del rot
    hp = jax.lax.Precision.HIGHEST
    lin = lambda x, w, b: jnp.dot(x, w, precision=hp) + b
    fa = lin(s, p["ws"][0], p["bs"][0:1])
    fb = lin(s, p["ws"][1], p["bs"][1:2])
    zs_from_s = fa[None, :, :] + fb[:, None, :]
    zc = zs_from_s + lin(z, p["wz"][0], p["bz"][0:1])
    h1 = jax.nn.relu(lin(jax.nn.relu(zc), p["wz"][1], p["bz"][1:2]))
    zs = zs_from_s + lin(h1, p["wz"][2], p["bz"][2:3])
    rel = trans[:, None, :] - trans[None, :, :]
    sp = jax.nn.relu(lin(jax.nn.relu(rel), p["w5"], p["b5"]))
    zs = zs + lin(sp, p["wz"][3], p["bz"][3:4])
    h2 = jax.nn.relu(lin(jax.nn.relu(zs), p["wz"][4], p["bz"][4:5]))
    zs = zs + lin(h2, p["wz"][5], p["bz"][5:6])
    logits = lin(zs, p["wl"], p["bl"])
    return jax.nn.log_softmax(logits, axis=-1)


def init_params(key, s_dim, z_dim, scale=0.1):
    ks = jax.random.split(key, 20)
    w = lambda k, i, o: scale * jax.random.normal(k, (i, o), jnp.float32)
    b = lambda k, o: scale * jax.random.normal(k, (1, o), jnp.float32)
    return dict(
        # lineara, linearb (weights stored pre-transposed as (in, out))
        ws=jnp.stack([w(ks[0], s_dim, z_dim), w(ks[1], s_dim, z_dim)]),
        bs=jnp.concatenate([b(ks[2], z_dim), b(ks[3], z_dim)], axis=0),
        # linear2, linear3, linear4, linear6, linear7, linear8
        wz=jnp.stack([w(ks[4], z_dim, z_dim), w(ks[5], z_dim, z_dim),
                      w(ks[6], z_dim, z_dim), w(ks[7], z_dim, z_dim),
                      w(ks[8], z_dim, z_dim), w(ks[9], z_dim, z_dim)]),
        bz=jnp.concatenate([b(ks[10], z_dim), b(ks[11], z_dim), b(ks[12], z_dim),
                            b(ks[13], z_dim), b(ks[14], z_dim), b(ks[15], z_dim)],
                           axis=0),
        # linear5 (3 -> z_dim), lastlinear (z_dim -> 5)
        w5=w(ks[16], 3, z_dim),
        b5=b(ks[17], z_dim),
        wl=w(ks[18], z_dim, 5),
        bl=b(ks[19], 5),
    )


if __name__ == "__main__":
    key = jax.random.PRNGKey(0)
    L, S_DIM, Z_DIM = 16, 32, 32

    k_s, k_z, k_t, k_p = jax.random.split(key, 4)
    s = jax.random.normal(k_s, (L, S_DIM), dtype=jnp.float32)
    z = jax.random.normal(k_z, (L, L, Z_DIM), dtype=jnp.float32)
    trans = jax.random.normal(k_t, (L, 3), dtype=jnp.float32)
    rot = jnp.broadcast_to(jnp.eye(3, dtype=jnp.float32), (L, 3, 3))  # unused by forward

    params = init_params(k_p, S_DIM, Z_DIM)

    out = lddt_predictor_forward(rot, trans, s, z, params)
    jax.block_until_ready(out)

    ref = lddt_predictor_ref(rot, trans, s, z, params)

    assert out.shape == (L, L, 5), out.shape
    # log_softmax rows must exponentiate-sum to 1
    assert bool(jnp.allclose(jnp.sum(jnp.exp(out), axis=-1), 1.0, atol=1e-3)), \
        "log_softmax normalization failed"
    max_err = float(jnp.max(jnp.abs(out - ref)))
    # bf16 MXU operands vs a HIGHEST-precision f32 reference -> modest tolerance.
    assert bool(jnp.allclose(out, ref, atol=6e-2, rtol=6e-2)), f"max abs err {max_err}"

    print("KERNEL_OK")
</pallas_src>

<mosaic_0001>
module attributes {stable_mosaic.version = 11 : i64} {
  func.func @_lddt_kernel(%arg0: i32, %arg1: i32, %arg2: memref<16x32xf32, #tpu.memory_space<vmem>>, %arg3: memref<8x32xf32, #tpu.memory_space<vmem>>, %arg4: memref<8x3xf32, #tpu.memory_space<vmem>>, %arg5: memref<16x3xf32, #tpu.memory_space<vmem>>, %arg6: memref<8x16x32xf32, #tpu.memory_space<vmem>>, %arg7: memref<6x32x32xbf16, #tpu.memory_space<vmem>>, %arg8: memref<6x32xf32, #tpu.memory_space<vmem>>, %arg9: memref<3x32xf32, #tpu.memory_space<vmem>>, %arg10: memref<1x32xf32, #tpu.memory_space<vmem>>, %arg11: memref<32x5xbf16, #tpu.memory_space<vmem>>, %arg12: memref<1x5xf32, #tpu.memory_space<vmem>>, %arg13: memref<8x80xf32, #tpu.memory_space<vmem>>) attributes {dimension_semantics = [#tpu.dimension_semantics<parallel>, #tpu.dimension_semantics<parallel>], iteration_bounds = array<i64: 2, 1>, scalar_prefetch = 0 : i64, scratch_operands = 0 : i64, tpu.core_type = #tpu.core_type<tc>, window_params = [{transform_indices = @transform_0, window_bounds = array<i64: 16, 32>}, {transform_indices = @transform_1, window_bounds = array<i64: 8, 32>}, {transform_indices = @transform_2, window_bounds = array<i64: 8, 3>}, {transform_indices = @transform_3, window_bounds = array<i64: 16, 3>}, {transform_indices = @transform_4, window_bounds = array<i64: 8, 16, 32>}, {pipeline_mode = #tpu.pipeline_mode<synchronous>, transform_indices = @transform_5, window_bounds = array<i64: 6, 32, 32>}, {pipeline_mode = #tpu.pipeline_mode<synchronous>, transform_indices = @transform_6, window_bounds = array<i64: 6, 32>}, {pipeline_mode = #tpu.pipeline_mode<synchronous>, transform_indices = @transform_7, window_bounds = array<i64: 3, 32>}, {pipeline_mode = #tpu.pipeline_mode<synchronous>, transform_indices = @transform_8, window_bounds = array<i64: 1, 32>}, {pipeline_mode = #tpu.pipeline_mode<synchronous>, transform_indices = @transform_9, window_bounds = array<i64: 32, 5>}, {pipeline_mode = #tpu.pipeline_mode<synchronous>, transform_indices = @transform_10, window_bounds = array<i64: 1, 5>}, {transform_indices = @transform_11, window_bounds = array<i64: 8, 80>}]} {
    %c0 = arith.constant 0 : index
    %c0_0 = arith.constant 0 : index
    %0 = vector.load %arg2[%c0, %c0_0] : memref<16x32xf32, #tpu.memory_space<vmem>>, vector<16x32xf32>
    %c0_1 = arith.constant 0 : index
    %c0_2 = arith.constant 0 : index
    %1 = vector.load %arg3[%c0_1, %c0_2] : memref<8x32xf32, #tpu.memory_space<vmem>>, vector<8x32xf32>
    %2 = vector.shape_cast %0 : vector<16x32xf32> to vector<1x16x32xf32>
    %3 = vector.broadcast %2 : vector<1x16x32xf32> to vector<8x16x32xf32>
    %4 = vector.shape_cast %1 : vector<8x32xf32> to vector<8x1x32xf32>
    %5 = vector.broadcast %4 : vector<8x1x32xf32> to vector<8x16x32xf32>
    %6 = arith.addf %3, %5 : vector<8x16x32xf32>
    %7 = vector.shape_cast %6 : vector<8x16x32xf32> to vector<128x32xf32>
    %c0_3 = arith.constant 0 : index
    %c0_4 = arith.constant 0 : index
    %c0_5 = arith.constant 0 : index
    %8 = vector.load %arg7[%c0_3, %c0_4, %c0_5] : memref<6x32x32xbf16, #tpu.memory_space<vmem>>, vector<1x32x32xbf16>
    %9 = vector.shape_cast %8 : vector<1x32x32xbf16> to vector<32x32xbf16>
    %c1 = arith.constant 1 : index
    %c0_6 = arith.constant 0 : index
    %c0_7 = arith.constant 0 : index
    %10 = vector.load %arg7[%c1, %c0_6, %c0_7] : memref<6x32x32xbf16, #tpu.memory_space<vmem>>, vector<1x32x32xbf16>
    %11 = vector.shape_cast %10 : vector<1x32x32xbf16> to vector<32x32xbf16>
    %c2 = arith.constant 2 : index
    %c0_8 = arith.constant 0 : index
    %c0_9 = arith.constant 0 : index
    %12 = vector.load %arg7[%c2, %c0_8, %c0_9] : memref<6x32x32xbf16, #tpu.memory_space<vmem>>, vector<1x32x32xbf16>
    %13 = vector.shape_cast %12 : vector<1x32x32xbf16> to vector<32x32xbf16>
    %c3 = arith.constant 3 : index
    %c0_10 = arith.constant 0 : index
    %c0_11 = arith.constant 0 : index
    %14 = vector.load %arg7[%c3, %c0_10, %c0_11] : memref<6x32x32xbf16, #tpu.memory_space<vmem>>, vector<1x32x32xbf16>
    %15 = vector.shape_cast %14 : vector<1x32x32xbf16> to vector<32x32xbf16>
    %c4 = arith.constant 4 : index
    %c0_12 = arith.constant 0 : index
    %c0_13 = arith.constant 0 : index
    %16 = vector.load %arg7[%c4, %c0_12, %c0_13] : memref<6x32x32xbf16, #tpu.memory_space<vmem>>, vector<1x32x32xbf16>
    %17 = vector.shape_cast %16 : vector<1x32x32xbf16> to vector<32x32xbf16>
    %c5 = arith.constant 5 : index
    %c0_14 = arith.constant 0 : index
    %c0_15 = arith.constant 0 : index
    %18 = vector.load %arg7[%c5, %c0_14, %c0_15] : memref<6x32x32xbf16, #tpu.memory_space<vmem>>, vector<1x32x32xbf16>
    %19 = vector.shape_cast %18 : vector<1x32x32xbf16> to vector<32x32xbf16>
    %c0_16 = arith.constant 0 : index
    %c0_17 = arith.constant 0 : index
    %20 = vector.load %arg8[%c0_16, %c0_17] : memref<6x32xf32, #tpu.memory_space<vmem>>, vector<1x32xf32>
    %c1_18 = arith.constant 1 : index
    %c0_19 = arith.constant 0 : index
    %21 = vector.load %arg8[%c1_18, %c0_19] : memref<6x32xf32, #tpu.memory_space<vmem>>, vector<1x32xf32>
    %c2_20 = arith.constant 2 : index
    %c0_21 = arith.constant 0 : index
    %22 = vector.load %arg8[%c2_20, %c0_21] : memref<6x32xf32, #tpu.memory_space<vmem>>, vector<1x32xf32>
    %c3_22 = arith.constant 3 : index
    %c0_23 = arith.constant 0 : index
    %23 = vector.load %arg8[%c3_22, %c0_23] : memref<6x32xf32, #tpu.memory_space<vmem>>, vector<1x32xf32>
    %c4_24 = arith.constant 4 : index
    %c0_25 = arith.constant 0 : index
    %24 = vector.load %arg8[%c4_24, %c0_25] : memref<6x32xf32, #tpu.memory_space<vmem>>, vector<1x32xf32>
    %c5_26 = arith.constant 5 : index
    %c0_27 = arith.constant 0 : index
    %25 = vector.load %arg8[%c5_26, %c0_27] : memref<6x32xf32, #tpu.memory_space<vmem>>, vector<1x32xf32>
    %c0_28 = arith.constant 0 : index
    %c0_29 = arith.constant 0 : index
    %c0_30 = arith.constant 0 : index
    %26 = vector.load %arg6[%c0_28, %c0_29, %c0_30] : memref<8x16x32xf32, #tpu.memory_space<vmem>>, vector<8x16x32xf32>
    %27 = vector.shape_cast %26 : vector<8x16x32xf32> to vector<128x32xf32>
    %28 = arith.truncf %27 : vector<128x32xf32> to vector<128x32xbf16>
    %cst = arith.constant dense<0.000000e+00> : vector<128x32xf32>
    %29 = tpu.matmul %28, %9, %cst {dimension_numbers = #tpu.dot_dimension_numbers<[1], [0], [0], [1], [0, 0, 1, 1], [], []>} : vector<128x32xbf16>, vector<32x32xbf16>, vector<128x32xf32> -> vector<128x32xf32>
    %30 = arith.addf %7, %29 : vector<128x32xf32>
    %31 = vector.broadcast %20 : vector<1x32xf32> to vector<128x32xf32>
    %32 = arith.addf %30, %31 : vector<128x32xf32>
    %cst_31 = arith.constant 0.000000e+00 : f32
    %33 = vector.broadcast %cst_31 : f32 to vector<128x32xf32>
    %34 = arith.maximumf %32, %33 : vector<128x32xf32>
    %35 = arith.truncf %34 : vector<128x32xf32> to vector<128x32xbf16>
    %cst_32 = arith.constant dense<0.000000e+00> : vector<128x32xf32>
    %36 = tpu.matmul %35, %11, %cst_32 {dimension_numbers = #tpu.dot_dimension_numbers<[1], [0], [0], [1], [0, 0, 1, 1], [], []>} : vector<128x32xbf16>, vector<32x32xbf16>, vector<128x32xf32> -> vector<128x32xf32>
    %37 = vector.broadcast %21 : vector<1x32xf32> to vector<128x32xf32>
    %38 = arith.addf %36, %37 : vector<128x32xf32>
    %cst_33 = arith.constant 0.000000e+00 : f32
    %39 = vector.broadcast %cst_33 : f32 to vector<128x32xf32>
    %40 = arith.maximumf %38, %39 : vector<128x32xf32>
    %41 = arith.truncf %40 : vector<128x32xf32> to vector<128x32xbf16>
    %cst_34 = arith.constant dense<0.000000e+00> : vector<128x32xf32>
    %42 = tpu.matmul %41, %13, %cst_34 {dimension_numbers = #tpu.dot_dimension_numbers<[1], [0], [0], [1], [0, 0, 1, 1], [], []>} : vector<128x32xbf16>, vector<32x32xbf16>, vector<128x32xf32> -> vector<128x32xf32>
    %43 = arith.addf %7, %42 : vector<128x32xf32>
    %44 = vector.broadcast %22 : vector<1x32xf32> to vector<128x32xf32>
    %45 = arith.addf %43, %44 : vector<128x32xf32>
    %c0_35 = arith.constant 0 : index
    %c0_36 = arith.constant 0 : index
    %46 = vector.load %arg4[%c0_35, %c0_36] : memref<8x3xf32, #tpu.memory_space<vmem>>, vector<8x3xf32>
    %c0_37 = arith.constant 0 : index
    %c0_38 = arith.constant 0 : index
    %47 = vector.load %arg5[%c0_37, %c0_38] : memref<16x3xf32, #tpu.memory_space<vmem>>, vector<16x3xf32>
    %48 = vector.shape_cast %46 : vector<8x3xf32> to vector<8x1x3xf32>
    %49 = vector.broadcast %48 : vector<8x1x3xf32> to vector<8x16x3xf32>
    %50 = vector.shape_cast %47 : vector<16x3xf32> to vector<1x16x3xf32>
    %51 = vector.broadcast %50 : vector<1x16x3xf32> to vector<8x16x3xf32>
    %52 = arith.subf %49, %51 : vector<8x16x3xf32>
    %cst_39 = arith.constant 0.000000e+00 : f32
    %53 = vector.broadcast %cst_39 : f32 to vector<8x16x3xf32>
    %54 = arith.maximumf %52, %53 : vector<8x16x3xf32>
    %55 = vector.shape_cast %54 : vector<8x16x3xf32> to vector<128x3xf32>
    %c0_40 = arith.constant 0 : index
    %c0_41 = arith.constant 0 : index
    %56 = vector.load %arg9[%c0_40, %c0_41] : memref<3x32xf32, #tpu.memory_space<vmem>>, vector<3x32xf32>
    %c0_42 = arith.constant 0 : index
    %c0_43 = arith.constant 0 : index
    %57 = vector.load %arg10[%c0_42, %c0_43] : memref<1x32xf32, #tpu.memory_space<vmem>>, vector<1x32xf32>
    %58 = vector.extract_strided_slice %55 {offsets = [0, 0], sizes = [128, 1], strides = [1, 1]} : vector<128x3xf32> to vector<128x1xf32>
    %59 = vector.extract_strided_slice %56 {offsets = [0, 0], sizes = [1, 32], strides = [1, 1]} : vector<3x32xf32> to vector<1x32xf32>
    %60 = vector.broadcast %58 : vector<128x1xf32> to vector<128x32xf32>
    %61 = vector.broadcast %59 : vector<1x32xf32> to vector<128x32xf32>
    %62 = arith.mulf %60, %61 : vector<128x32xf32>
    %63 = vector.broadcast %57 : vector<1x32xf32> to vector<128x32xf32>
    %64 = arith.addf %63, %62 : vector<128x32xf32>
    %65 = vector.extract_strided_slice %55 {offsets = [0, 1], sizes = [128, 1], strides = [1, 1]} : vector<128x3xf32> to vector<128x1xf32>
    %66 = vector.extract_strided_slice %56 {offsets = [1, 0], sizes = [1, 32], strides = [1, 1]} : vector<3x32xf32> to vector<1x32xf32>
    %67 = vector.broadcast %65 : vector<128x1xf32> to vector<128x32xf32>
    %68 = vector.broadcast %66 : vector<1x32xf32> to vector<128x32xf32>
    %69 = arith.mulf %67, %68 : vector<128x32xf32>
    %70 = arith.addf %64, %69 : vector<128x32xf32>
    %71 = vector.extract_strided_slice %55 {offsets = [0, 2], sizes = [128, 1], strides = [1, 1]} : vector<128x3xf32> to vector<128x1xf32>
    %72 = vector.extract_strided_slice %56 {offsets = [2, 0], sizes = [1, 32], strides = [1, 1]} : vector<3x32xf32> to vector<1x32xf32>
    %73 = vector.broadcast %71 : vector<128x1xf32> to vector<128x32xf32>
    %74 = vector.broadcast %72 : vector<1x32xf32> to vector<128x32xf32>
    %75 = arith.mulf %73, %74 : vector<128x32xf32>
    %76 = arith.addf %70, %75 : vector<128x32xf32>
    %cst_44 = arith.constant 0.000000e+00 : f32
    %77 = vector.broadcast %cst_44 : f32 to vector<128x32xf32>
    %78 = arith.maximumf %76, %77 : vector<128x32xf32>
    %79 = arith.truncf %78 : vector<128x32xf32> to vector<128x32xbf16>
    %cst_45 = arith.constant dense<0.000000e+00> : vector<128x32xf32>
    %80 = tpu.matmul %79, %15, %cst_45 {dimension_numbers = #tpu.dot_dimension_numbers<[1], [0], [0], [1], [0, 0, 1, 1], [], []>} : vector<128x32xbf16>, vector<32x32xbf16>, vector<128x32xf32> -> vector<128x32xf32>
    %81 = arith.addf %45, %80 : vector<128x32xf32>
    %82 = vector.broadcast %23 : vector<1x32xf32> to vector<128x32xf32>
    %83 = arith.addf %81, %82 : vector<128x32xf32>
    %cst_46 = arith.constant 0.000000e+00 : f32
    %84 = vector.broadcast %cst_46 : f32 to vector<128x32xf32>
    %85 = arith.maximumf %83, %84 : vector<128x32xf32>
    %86 = arith.truncf %85 : vector<128x32xf32> to vector<128x32xbf16>
    %cst_47 = arith.constant dense<0.000000e+00> : vector<128x32xf32>
    %87 = tpu.matmul %86, %17, %cst_47 {dimension_numbers = #tpu.dot_dimension_numbers<[1], [0], [0], [1], [0, 0, 1, 1], [], []>} : vector<128x32xbf16>, vector<32x32xbf16>, vector<128x32xf32> -> vector<128x32xf32>
    %88 = vector.broadcast %24 : vector<1x32xf32> to vector<128x32xf32>
    %89 = arith.addf %87, %88 : vector<128x32xf32>
    %cst_48 = arith.constant 0.000000e+00 : f32
    %90 = vector.broadcast %cst_48 : f32 to vector<128x32xf32>
    %91 = arith.maximumf %89, %90 : vector<128x32xf32>
    %92 = arith.truncf %91 : vector<128x32xf32> to vector<128x32xbf16>
    %cst_49 = arith.constant dense<0.000000e+00> : vector<128x32xf32>
    %93 = tpu.matmul %92, %19, %cst_49 {dimension_numbers = #tpu.dot_dimension_numbers<[1], [0], [0], [1], [0, 0, 1, 1], [], []>} : vector<128x32xbf16>, vector<32x32xbf16>, vector<128x32xf32> -> vector<128x32xf32>
    %94 = arith.addf %83, %93 : vector<128x32xf32>
    %95 = vector.broadcast %25 : vector<1x32xf32> to vector<128x32xf32>
    %96 = arith.addf %94, %95 : vector<128x32xf32>
    %97 = arith.truncf %96 : vector<128x32xf32> to vector<128x32xbf16>
    %c0_50 = arith.constant 0 : index
    %c0_51 = arith.constant 0 : index
    %98 = vector.load %arg11[%c0_50, %c0_51] : memref<32x5xbf16, #tpu.memory_space<vmem>>, vector<32x5xbf16>
    %cst_52 = arith.constant dense<0.000000e+00> : vector<128x5xf32>
    %99 = tpu.matmul %97, %98, %cst_52 {dimension_numbers = #tpu.dot_dimension_numbers<[1], [0], [0], [1], [0, 0, 1, 1], [], []>} : vector<128x32xbf16>, vector<32x5xbf16>, vector<128x5xf32> -> vector<128x5xf32>
    %c0_53 = arith.constant 0 : index
    %c0_54 = arith.constant 0 : index
    %100 = vector.load %arg12[%c0_53, %c0_54] : memref<1x5xf32, #tpu.memory_space<vmem>>, vector<1x5xf32>
    %101 = vector.broadcast %100 : vector<1x5xf32> to vector<128x5xf32>
    %102 = arith.addf %99, %101 : vector<128x5xf32>
    %cst_55 = arith.constant dense<0xFF800000> : vector<128xf32>
    %103 = vector.multi_reduction <maximumf>, %102, %cst_55 [1] : vector<128x5xf32> to vector<128xf32>
    %104 = vector.shape_cast %103 : vector<128xf32> to vector<128x1xf32>
    %105 = vector.broadcast %104 : vector<128x1xf32> to vector<128x5xf32>
    %106 = arith.subf %102, %105 : vector<128x5xf32>
    %107 = math.exp %106 : vector<128x5xf32>
    %cst_56 = arith.constant dense<0.000000e+00> : vector<128xf32>
    %108 = vector.multi_reduction <add>, %107, %cst_56 [1] : vector<128x5xf32> to vector<128xf32>
    %109 = vector.shape_cast %108 : vector<128xf32> to vector<128x1xf32>
    %110 = math.log %109 : vector<128x1xf32>
    %111 = vector.broadcast %110 : vector<128x1xf32> to vector<128x5xf32>
    %112 = arith.subf %106, %111 : vector<128x5xf32>
    %113 = vector.shape_cast %112 : vector<128x5xf32> to vector<8x80xf32>
    %c0_57 = arith.constant 0 : index
    %c0_58 = arith.constant 0 : index
    %114 = vector.load %arg13[%c0_57, %c0_58] : memref<8x80xf32, #tpu.memory_space<vmem>>, vector<8x80xf32>
    tpu.vector_store %arg13[%c0_57, %c0_58], %113 {strides = array<i32>} : memref<8x80xf32, #tpu.memory_space<vmem>>, vector<8x80xf32>,
    return
  }
  func.func @transform_0(%arg0: i32, %arg1: i32) -> (i32, i32) {
    %c0_i32 = arith.constant 0 : i32
    %c0_i32_0 = arith.constant 0 : i32
    return %arg1, %c0_i32 : i32, i32
  }
  func.func @transform_1(%arg0: i32, %arg1: i32) -> (i32, i32) {
    %c0_i32 = arith.constant 0 : i32
    %c0_i32_0 = arith.constant 0 : i32
    return %arg0, %c0_i32 : i32, i32
  }
  func.func @transform_2(%arg0: i32, %arg1: i32) -> (i32, i32) {
    %c0_i32 = arith.constant 0 : i32
    %c0_i32_0 = arith.constant 0 : i32
    return %arg0, %c0_i32 : i32, i32
  }
  func.func @transform_3(%arg0: i32, %arg1: i32) -> (i32, i32) {
    %c0_i32 = arith.constant 0 : i32
    %c0_i32_0 = arith.constant 0 : i32
    return %arg1, %c0_i32 : i32, i32
  }
  func.func @transform_4(%arg0: i32, %arg1: i32) -> (i32, i32, i32) {
    %c0_i32 = arith.constant 0 : i32
    %c0_i32_0 = arith.constant 0 : i32
    return %arg0, %arg1, %c0_i32 : i32, i32, i32
  }
  func.func @transform_5(%arg0: i32, %arg1: i32) -> (i32, i32, i32) {
    %c0_i32 = arith.constant 0 : i32
    %c0_i32_0 = arith.constant 0 : i32
    %c0_i32_1 = arith.constant 0 : i32
    %c0_i32_2 = arith.constant 0 : i32
    return %c0_i32, %c0_i32_0, %c0_i32_1 : i32, i32, i32
  }
  func.func @transform_6(%arg0: i32, %arg1: i32) -> (i32, i32) {
    %c0_i32 = arith.constant 0 : i32
    %c0_i32_0 = arith.constant 0 : i32
    %c0_i32_1 = arith.constant 0 : i32
    return %c0_i32, %c0_i32_0 : i32, i32
  }
  func.func @transform_7(%arg0: i32, %arg1: i32) -> (i32, i32) {
    %c0_i32 = arith.constant 0 : i32
    %c0_i32_0 = arith.constant 0 : i32
    %c0_i32_1 = arith.constant 0 : i32
    return %c0_i32, %c0_i32_0 : i32, i32
  }
  func.func @transform_8(%arg0: i32, %arg1: i32) -> (i32, i32) {
    %c0_i32 = arith.constant 0 : i32
    %c0_i32_0 = arith.constant 0 : i32
    %c0_i32_1 = arith.constant 0 : i32
    return %c0_i32, %c0_i32_0 : i32, i32
  }
  func.func @transform_9(%arg0: i32, %arg1: i32) -> (i32, i32) {
    %c0_i32 = arith.constant 0 : i32
    %c0_i32_0 = arith.constant 0 : i32
    %c0_i32_1 = arith.constant 0 : i32
    return %c0_i32, %c0_i32_0 : i32, i32
  }
  func.func @transform_10(%arg0: i32, %arg1: i32) -> (i32, i32) {
    %c0_i32 = arith.constant 0 : i32
    %c0_i32_0 = arith.constant 0 : i32
    %c0_i32_1 = arith.constant 0 : i32
    return %c0_i32, %c0_i32_0 : i32, i32
  }
  func.func @transform_11(%arg0: i32, %arg1: i32) -> (i32, i32) {
    %c0_i32 = arith.constant 0 : i32
    return %arg0, %arg1 : i32, i32
  }
}

module attributes {stable_mosaic.version = 11 : i64} {
  func.func @_lddt_kernel(%arg0: i32, %arg1: i32, %arg2: memref<16x32xf32, #tpu.memory_space<vmem>>, %arg3: memref<8x32xf32, #tpu.memory_space<vmem>>, %arg4: memref<8x3xf32, #tpu.memory_space<vmem>>, %arg5: memref<16x3xf32, #tpu.memory_space<vmem>>, %arg6: memref<8x16x32xf32, #tpu.memory_space<vmem>>, %arg7: memref<6x32x32xbf16, #tpu.memory_space<vmem>>, %arg8: memref<6x32xf32, #tpu.memory_space<vmem>>, %arg9: memref<3x32xf32, #tpu.memory_space<vmem>>, %arg10: memref<1x32xf32, #tpu.memory_space<vmem>>, %arg11: memref<32x5xbf16, #tpu.memory_space<vmem>>, %arg12: memref<1x5xf32, #tpu.memory_space<vmem>>, %arg13: memref<8x16x5xf32, #tpu.memory_space<vmem>>) attributes {dimension_semantics = [#tpu.dimension_semantics<parallel>, #tpu.dimension_semantics<parallel>], iteration_bounds = array<i64: 2, 1>, scalar_prefetch = 0 : i64, scratch_operands = 0 : i64, tpu.core_type = #tpu.core_type<tc>, window_params = [{transform_indices = @transform_0, window_bounds = array<i64: 16, 32>}, {transform_indices = @transform_1, window_bounds = array<i64: 8, 32>}, {transform_indices = @transform_2, window_bounds = array<i64: 8, 3>}, {transform_indices = @transform_3, window_bounds = array<i64: 16, 3>}, {transform_indices = @transform_4, window_bounds = array<i64: 8, 16, 32>}, {pipeline_mode = #tpu.pipeline_mode<synchronous>, transform_indices = @transform_5, window_bounds = array<i64: 6, 32, 32>}, {pipeline_mode = #tpu.pipeline_mode<synchronous>, transform_indices = @transform_6, window_bounds = array<i64: 6, 32>}, {pipeline_mode = #tpu.pipeline_mode<synchronous>, transform_indices = @transform_7, window_bounds = array<i64: 3, 32>}, {pipeline_mode = #tpu.pipeline_mode<synchronous>, transform_indices = @transform_8, window_bounds = array<i64: 1, 32>}, {pipeline_mode = #tpu.pipeline_mode<synchronous>, transform_indices = @transform_9, window_bounds = array<i64: 32, 5>}, {pipeline_mode = #tpu.pipeline_mode<synchronous>, transform_indices = @transform_10, window_bounds = array<i64: 1, 5>}, {transform_indices = @transform_11, window_bounds = array<i64: 8, 16, 5>}]} {
    %c0 = arith.constant 0 : index
    %c0_0 = arith.constant 0 : index
    %0 = vector.load %arg2[%c0, %c0_0] : memref<16x32xf32, #tpu.memory_space<vmem>>, vector<16x32xf32>
    %c0_1 = arith.constant 0 : index
    %c0_2 = arith.constant 0 : index
    %1 = vector.load %arg3[%c0_1, %c0_2] : memref<8x32xf32, #tpu.memory_space<vmem>>, vector<8x32xf32>
    %2 = vector.shape_cast %0 : vector<16x32xf32> to vector<1x16x32xf32>
    %3 = vector.broadcast %2 : vector<1x16x32xf32> to vector<8x16x32xf32>
    %4 = vector.shape_cast %1 : vector<8x32xf32> to vector<8x1x32xf32>
    %5 = vector.broadcast %4 : vector<8x1x32xf32> to vector<8x16x32xf32>
    %6 = arith.addf %3, %5 : vector<8x16x32xf32>
    %7 = vector.shape_cast %6 : vector<8x16x32xf32> to vector<128x32xf32>
    %c0_3 = arith.constant 0 : index
    %c0_4 = arith.constant 0 : index
    %c0_5 = arith.constant 0 : index
    %8 = vector.load %arg7[%c0_3, %c0_4, %c0_5] : memref<6x32x32xbf16, #tpu.memory_space<vmem>>, vector<1x32x32xbf16>
    %9 = vector.shape_cast %8 : vector<1x32x32xbf16> to vector<32x32xbf16>
    %c1 = arith.constant 1 : index
    %c0_6 = arith.constant 0 : index
    %c0_7 = arith.constant 0 : index
    %10 = vector.load %arg7[%c1, %c0_6, %c0_7] : memref<6x32x32xbf16, #tpu.memory_space<vmem>>, vector<1x32x32xbf16>
    %11 = vector.shape_cast %10 : vector<1x32x32xbf16> to vector<32x32xbf16>
    %c2 = arith.constant 2 : index
    %c0_8 = arith.constant 0 : index
    %c0_9 = arith.constant 0 : index
    %12 = vector.load %arg7[%c2, %c0_8, %c0_9] : memref<6x32x32xbf16, #tpu.memory_space<vmem>>, vector<1x32x32xbf16>
    %13 = vector.shape_cast %12 : vector<1x32x32xbf16> to vector<32x32xbf16>
    %c3 = arith.constant 3 : index
    %c0_10 = arith.constant 0 : index
    %c0_11 = arith.constant 0 : index
    %14 = vector.load %arg7[%c3, %c0_10, %c0_11] : memref<6x32x32xbf16, #tpu.memory_space<vmem>>, vector<1x32x32xbf16>
    %15 = vector.shape_cast %14 : vector<1x32x32xbf16> to vector<32x32xbf16>
    %c4 = arith.constant 4 : index
    %c0_12 = arith.constant 0 : index
    %c0_13 = arith.constant 0 : index
    %16 = vector.load %arg7[%c4, %c0_12, %c0_13] : memref<6x32x32xbf16, #tpu.memory_space<vmem>>, vector<1x32x32xbf16>
    %17 = vector.shape_cast %16 : vector<1x32x32xbf16> to vector<32x32xbf16>
    %c5 = arith.constant 5 : index
    %c0_14 = arith.constant 0 : index
    %c0_15 = arith.constant 0 : index
    %18 = vector.load %arg7[%c5, %c0_14, %c0_15] : memref<6x32x32xbf16, #tpu.memory_space<vmem>>, vector<1x32x32xbf16>
    %19 = vector.shape_cast %18 : vector<1x32x32xbf16> to vector<32x32xbf16>
    %c0_16 = arith.constant 0 : index
    %c0_17 = arith.constant 0 : index
    %20 = vector.load %arg8[%c0_16, %c0_17] : memref<6x32xf32, #tpu.memory_space<vmem>>, vector<1x32xf32>
    %c1_18 = arith.constant 1 : index
    %c0_19 = arith.constant 0 : index
    %21 = vector.load %arg8[%c1_18, %c0_19] : memref<6x32xf32, #tpu.memory_space<vmem>>, vector<1x32xf32>
    %c2_20 = arith.constant 2 : index
    %c0_21 = arith.constant 0 : index
    %22 = vector.load %arg8[%c2_20, %c0_21] : memref<6x32xf32, #tpu.memory_space<vmem>>, vector<1x32xf32>
    %c3_22 = arith.constant 3 : index
    %c0_23 = arith.constant 0 : index
    %23 = vector.load %arg8[%c3_22, %c0_23] : memref<6x32xf32, #tpu.memory_space<vmem>>, vector<1x32xf32>
    %c4_24 = arith.constant 4 : index
    %c0_25 = arith.constant 0 : index
    %24 = vector.load %arg8[%c4_24, %c0_25] : memref<6x32xf32, #tpu.memory_space<vmem>>, vector<1x32xf32>
    %c5_26 = arith.constant 5 : index
    %c0_27 = arith.constant 0 : index
    %25 = vector.load %arg8[%c5_26, %c0_27] : memref<6x32xf32, #tpu.memory_space<vmem>>, vector<1x32xf32>
    %c0_28 = arith.constant 0 : index
    %c0_29 = arith.constant 0 : index
    %c0_30 = arith.constant 0 : index
    %26 = vector.load %arg6[%c0_28, %c0_29, %c0_30] : memref<8x16x32xf32, #tpu.memory_space<vmem>>, vector<8x16x32xf32>
    %27 = vector.shape_cast %26 : vector<8x16x32xf32> to vector<128x32xf32>
    %28 = arith.truncf %27 : vector<128x32xf32> to vector<128x32xbf16>
    %cst = arith.constant dense<0.000000e+00> : vector<128x32xf32>
    %29 = tpu.matmul %28, %9, %cst {dimension_numbers = #tpu.dot_dimension_numbers<[1], [0], [0], [1], [0, 0, 1, 1], [], []>} : vector<128x32xbf16>, vector<32x32xbf16>, vector<128x32xf32> -> vector<128x32xf32>
    %30 = arith.addf %7, %29 : vector<128x32xf32>
    %31 = vector.broadcast %20 : vector<1x32xf32> to vector<128x32xf32>
    %32 = arith.addf %30, %31 : vector<128x32xf32>
    %cst_31 = arith.constant 0.000000e+00 : f32
    %33 = vector.broadcast %cst_31 : f32 to vector<128x32xf32>
    %34 = arith.maximumf %32, %33 : vector<128x32xf32>
    %35 = arith.truncf %34 : vector<128x32xf32> to vector<128x32xbf16>
    %cst_32 = arith.constant dense<0.000000e+00> : vector<128x32xf32>
    %36 = tpu.matmul %35, %11, %cst_32 {dimension_numbers = #tpu.dot_dimension_numbers<[1], [0], [0], [1], [0, 0, 1, 1], [], []>} : vector<128x32xbf16>, vector<32x32xbf16>, vector<128x32xf32> -> vector<128x32xf32>
    %37 = vector.broadcast %21 : vector<1x32xf32> to vector<128x32xf32>
    %38 = arith.addf %36, %37 : vector<128x32xf32>
    %cst_33 = arith.constant 0.000000e+00 : f32
    %39 = vector.broadcast %cst_33 : f32 to vector<128x32xf32>
    %40 = arith.maximumf %38, %39 : vector<128x32xf32>
    %41 = arith.truncf %40 : vector<128x32xf32> to vector<128x32xbf16>
    %cst_34 = arith.constant dense<0.000000e+00> : vector<128x32xf32>
    %42 = tpu.matmul %41, %13, %cst_34 {dimension_numbers = #tpu.dot_dimension_numbers<[1], [0], [0], [1], [0, 0, 1, 1], [], []>} : vector<128x32xbf16>, vector<32x32xbf16>, vector<128x32xf32> -> vector<128x32xf32>
    %43 = arith.addf %7, %42 : vector<128x32xf32>
    %44 = vector.broadcast %22 : vector<1x32xf32> to vector<128x32xf32>
    %45 = arith.addf %43, %44 : vector<128x32xf32>
    %c0_35 = arith.constant 0 : index
    %c0_36 = arith.constant 0 : index
    %46 = vector.load %arg4[%c0_35, %c0_36] : memref<8x3xf32, #tpu.memory_space<vmem>>, vector<8x3xf32>
    %c0_37 = arith.constant 0 : index
    %c0_38 = arith.constant 0 : index
    %47 = vector.load %arg5[%c0_37, %c0_38] : memref<16x3xf32, #tpu.memory_space<vmem>>, vector<16x3xf32>
    %48 = vector.shape_cast %46 : vector<8x3xf32> to vector<8x1x3xf32>
    %49 = vector.broadcast %48 : vector<8x1x3xf32> to vector<8x16x3xf32>
    %50 = vector.shape_cast %47 : vector<16x3xf32> to vector<1x16x3xf32>
    %51 = vector.broadcast %50 : vector<1x16x3xf32> to vector<8x16x3xf32>
    %52 = arith.subf %49, %51 : vector<8x16x3xf32>
    %cst_39 = arith.constant 0.000000e+00 : f32
    %53 = vector.broadcast %cst_39 : f32 to vector<8x16x3xf32>
    %54 = arith.maximumf %52, %53 : vector<8x16x3xf32>
    %55 = vector.shape_cast %54 : vector<8x16x3xf32> to vector<128x3xf32>
    %c0_40 = arith.constant 0 : index
    %c0_41 = arith.constant 0 : index
    %56 = vector.load %arg9[%c0_40, %c0_41] : memref<3x32xf32, #tpu.memory_space<vmem>>, vector<3x32xf32>
    %c0_42 = arith.constant 0 : index
    %c0_43 = arith.constant 0 : index
    %57 = vector.load %arg10[%c0_42, %c0_43] : memref<1x32xf32, #tpu.memory_space<vmem>>, vector<1x32xf32>
    %58 = vector.extract_strided_slice %55 {offsets = [0, 0], sizes = [128, 1], strides = [1, 1]} : vector<128x3xf32> to vector<128x1xf32>
    %59 = vector.extract_strided_slice %56 {offsets = [0, 0], sizes = [1, 32], strides = [1, 1]} : vector<3x32xf32> to vector<1x32xf32>
    %60 = vector.broadcast %58 : vector<128x1xf32> to vector<128x32xf32>
    %61 = vector.broadcast %59 : vector<1x32xf32> to vector<128x32xf32>
    %62 = arith.mulf %60, %61 : vector<128x32xf32>
    %63 = vector.broadcast %57 : vector<1x32xf32> to vector<128x32xf32>
    %64 = arith.addf %63, %62 : vector<128x32xf32>
    %65 = vector.extract_strided_slice %55 {offsets = [0, 1], sizes = [128, 1], strides = [1, 1]} : vector<128x3xf32> to vector<128x1xf32>
    %66 = vector.extract_strided_slice %56 {offsets = [1, 0], sizes = [1, 32], strides = [1, 1]} : vector<3x32xf32> to vector<1x32xf32>
    %67 = vector.broadcast %65 : vector<128x1xf32> to vector<128x32xf32>
    %68 = vector.broadcast %66 : vector<1x32xf32> to vector<128x32xf32>
    %69 = arith.mulf %67, %68 : vector<128x32xf32>
    %70 = arith.addf %64, %69 : vector<128x32xf32>
    %71 = vector.extract_strided_slice %55 {offsets = [0, 2], sizes = [128, 1], strides = [1, 1]} : vector<128x3xf32> to vector<128x1xf32>
    %72 = vector.extract_strided_slice %56 {offsets = [2, 0], sizes = [1, 32], strides = [1, 1]} : vector<3x32xf32> to vector<1x32xf32>
    %73 = vector.broadcast %71 : vector<128x1xf32> to vector<128x32xf32>
    %74 = vector.broadcast %72 : vector<1x32xf32> to vector<128x32xf32>
    %75 = arith.mulf %73, %74 : vector<128x32xf32>
    %76 = arith.addf %70, %75 : vector<128x32xf32>
    %cst_44 = arith.constant 0.000000e+00 : f32
    %77 = vector.broadcast %cst_44 : f32 to vector<128x32xf32>
    %78 = arith.maximumf %76, %77 : vector<128x32xf32>
    %79 = arith.truncf %78 : vector<128x32xf32> to vector<128x32xbf16>
    %cst_45 = arith.constant dense<0.000000e+00> : vector<128x32xf32>
    %80 = tpu.matmul %79, %15, %cst_45 {dimension_numbers = #tpu.dot_dimension_numbers<[1], [0], [0], [1], [0, 0, 1, 1], [], []>} : vector<128x32xbf16>, vector<32x32xbf16>, vector<128x32xf32> -> vector<128x32xf32>
    %81 = arith.addf %45, %80 : vector<128x32xf32>
    %82 = vector.broadcast %23 : vector<1x32xf32> to vector<128x32xf32>
    %83 = arith.addf %81, %82 : vector<128x32xf32>
    %cst_46 = arith.constant 0.000000e+00 : f32
    %84 = vector.broadcast %cst_46 : f32 to vector<128x32xf32>
    %85 = arith.maximumf %83, %84 : vector<128x32xf32>
    %86 = arith.truncf %85 : vector<128x32xf32> to vector<128x32xbf16>
    %cst_47 = arith.constant dense<0.000000e+00> : vector<128x32xf32>
    %87 = tpu.matmul %86, %17, %cst_47 {dimension_numbers = #tpu.dot_dimension_numbers<[1], [0], [0], [1], [0, 0, 1, 1], [], []>} : vector<128x32xbf16>, vector<32x32xbf16>, vector<128x32xf32> -> vector<128x32xf32>
    %88 = vector.broadcast %24 : vector<1x32xf32> to vector<128x32xf32>
    %89 = arith.addf %87, %88 : vector<128x32xf32>
    %cst_48 = arith.constant 0.000000e+00 : f32
    %90 = vector.broadcast %cst_48 : f32 to vector<128x32xf32>
    %91 = arith.maximumf %89, %90 : vector<128x32xf32>
    %92 = arith.truncf %91 : vector<128x32xf32> to vector<128x32xbf16>
    %cst_49 = arith.constant dense<0.000000e+00> : vector<128x32xf32>
    %93 = tpu.matmul %92, %19, %cst_49 {dimension_numbers = #tpu.dot_dimension_numbers<[1], [0], [0], [1], [0, 0, 1, 1], [], []>} : vector<128x32xbf16>, vector<32x32xbf16>, vector<128x32xf32> -> vector<128x32xf32>
    %94 = arith.addf %83, %93 : vector<128x32xf32>
    %95 = vector.broadcast %25 : vector<1x32xf32> to vector<128x32xf32>
    %96 = arith.addf %94, %95 : vector<128x32xf32>
    %97 = arith.truncf %96 : vector<128x32xf32> to vector<128x32xbf16>
    %c0_50 = arith.constant 0 : index
    %c0_51 = arith.constant 0 : index
    %98 = vector.load %arg11[%c0_50, %c0_51] : memref<32x5xbf16, #tpu.memory_space<vmem>>, vector<32x5xbf16>
    %cst_52 = arith.constant dense<0.000000e+00> : vector<128x5xf32>
    %99 = tpu.matmul %97, %98, %cst_52 {dimension_numbers = #tpu.dot_dimension_numbers<[1], [0], [0], [1], [0, 0, 1, 1], [], []>} : vector<128x32xbf16>, vector<32x5xbf16>, vector<128x5xf32> -> vector<128x5xf32>
    %c0_53 = arith.constant 0 : index
    %c0_54 = arith.constant 0 : index
    %100 = vector.load %arg12[%c0_53, %c0_54] : memref<1x5xf32, #tpu.memory_space<vmem>>, vector<1x5xf32>
    %101 = vector.broadcast %100 : vector<1x5xf32> to vector<128x5xf32>
    %102 = arith.addf %99, %101 : vector<128x5xf32>
    %cst_55 = arith.constant dense<0xFF800000> : vector<128xf32>
    %103 = vector.multi_reduction <maximumf>, %102, %cst_55 [1] : vector<128x5xf32> to vector<128xf32>
    %104 = vector.shape_cast %103 : vector<128xf32> to vector<128x1xf32>
    %105 = vector.broadcast %104 : vector<128x1xf32> to vector<128x5xf32>
    %106 = arith.subf %102, %105 : vector<128x5xf32>
    %107 = math.exp %106 : vector<128x5xf32>
    %cst_56 = arith.constant dense<0.000000e+00> : vector<128xf32>
    %108 = vector.multi_reduction <add>, %107, %cst_56 [1] : vector<128x5xf32> to vector<128xf32>
    %109 = vector.shape_cast %108 : vector<128xf32> to vector<128x1xf32>
    %110 = math.log %109 : vector<128x1xf32>
    %111 = vector.broadcast %110 : vector<128x1xf32> to vector<128x5xf32>
    %112 = arith.subf %106, %111 : vector<128x5xf32>
    %113 = vector.shape_cast %112 : vector<128x5xf32> to vector<8x16x5xf32>
    %c0_57 = arith.constant 0 : index
    %c0_58 = arith.constant 0 : index
    %c0_59 = arith.constant 0 : index
    %114 = vector.load %arg13[%c0_57, %c0_58, %c0_59] : memref<8x16x5xf32, #tpu.memory_space<vmem>>, vector<8x16x5xf32>
    tpu.vector_store %arg13[%c0_57, %c0_58, %c0_59], %113 {strides = array<i32>} : memref<8x16x5xf32, #tpu.memory_space<vmem>>, vector<8x16x5xf32>,
    return
  }
  func.func @transform_0(%arg0: i32, %arg1: i32) -> (i32, i32) {
    %c0_i32 = arith.constant 0 : i32
    %c0_i32_0 = arith.constant 0 : i32
    return %arg1, %c0_i32 : i32, i32
  }
  func.func @transform_1(%arg0: i32, %arg1: i32) -> (i32, i32) {
    %c0_i32 = arith.constant 0 : i32
    %c0_i32_0 = arith.constant 0 : i32
    return %arg0, %c0_i32 : i32, i32
  }
  func.func @transform_2(%arg0: i32, %arg1: i32) -> (i32, i32) {
    %c0_i32 = arith.constant 0 : i32
    %c0_i32_0 = arith.constant 0 : i32
    return %arg0, %c0_i32 : i32, i32
  }
  func.func @transform_3(%arg0: i32, %arg1: i32) -> (i32, i32) {
    %c0_i32 = arith.constant 0 : i32
    %c0_i32_0 = arith.constant 0 : i32
    return %arg1, %c0_i32 : i32, i32
  }
  func.func @transform_4(%arg0: i32, %arg1: i32) -> (i32, i32, i32) {
    %c0_i32 = arith.constant 0 : i32
    %c0_i32_0 = arith.constant 0 : i32
    return %arg0, %arg1, %c0_i32 : i32, i32, i32
  }
  func.func @transform_5(%arg0: i32, %arg1: i32) -> (i32, i32, i32) {
    %c0_i32 = arith.constant 0 : i32
    %c0_i32_0 = arith.constant 0 : i32
    %c0_i32_1 = arith.constant 0 : i32
    %c0_i32_2 = arith.constant 0 : i32
    return %c0_i32, %c0_i32_0, %c0_i32_1 : i32, i32, i32
  }
  func.func @transform_6(%arg0: i32, %arg1: i32) -> (i32, i32) {
    %c0_i32 = arith.constant 0 : i32
    %c0_i32_0 = arith.constant 0 : i32
    %c0_i32_1 = arith.constant 0 : i32
    return %c0_i32, %c0_i32_0 : i32, i32
  }
  func.func @transform_7(%arg0: i32, %arg1: i32) -> (i32, i32) {
    %c0_i32 = arith.constant 0 : i32
    %c0_i32_0 = arith.constant 0 : i32
    %c0_i32_1 = arith.constant 0 : i32
    return %c0_i32, %c0_i32_0 : i32, i32
  }
  func.func @transform_8(%arg0: i32, %arg1: i32) -> (i32, i32) {
    %c0_i32 = arith.constant 0 : i32
    %c0_i32_0 = arith.constant 0 : i32
    %c0_i32_1 = arith.constant 0 : i32
    return %c0_i32, %c0_i32_0 : i32, i32
  }
  func.func @transform_9(%arg0: i32, %arg1: i32) -> (i32, i32) {
    %c0_i32 = arith.constant 0 : i32
    %c0_i32_0 = arith.constant 0 : i32
    %c0_i32_1 = arith.constant 0 : i32
    return %c0_i32, %c0_i32_0 : i32, i32
  }
  func.func @transform_10(%arg0: i32, %arg1: i32) -> (i32, i32) {
    %c0_i32 = arith.constant 0 : i32
    %c0_i32_0 = arith.constant 0 : i32
    %c0_i32_1 = arith.constant 0 : i32
    return %c0_i32, %c0_i32_0 : i32, i32
  }
  func.func @transform_11(%arg0: i32, %arg1: i32) -> (i32, i32, i32) {
    %c0_i32 = arith.constant 0 : i32
    %c0_i32_0 = arith.constant 0 : i32
    return %arg0, %arg1, %c0_i32 : i32, i32, i32
  }
}

</mosaic_0001>

<bundles_post_ra>
// kernel: tpu_custom_call.1
= control target key start
LH: loop header
LB: loop body
LE: loop exit
PB: predicated region body
PF: predicated region fallthrough
CT: control target
= control target key end

     0   :  { %s4289_s0 = inlined_call_operand.vmem [shape: f32[16,32], index: 0, kind: input, shape index: {}]   ;;  %s4290_s1 = inlined_call_operand.vmem [shape: f32[16,32], index: 1, kind: input, shape index: {}]   ;;  %s4291_s2 = inlined_call_operand.vmem [shape: f32[16,3], index: 2, kind: input, shape index: {}]   ;;  %s4292_s3 = inlined_call_operand.vmem [shape: f32[16,3], index: 3, kind: input, shape index: {}]   ;;  %s4293_s4 = inlined_call_operand.hbm [shape: f32[16,16,32], index: 4, kind: input, shape index: {}]   ;;  %s4294_s5 = inlined_call_operand.hbm [shape: bf16[6,32,32], index: 5, kind: input, shape index: {}]   ;;  %s4295_s6 = inlined_call_operand.vmem [shape: f32[6,32], index: 6, kind: input, shape index: {}]   ;;  %s4296_s7 = inlined_call_operand.vmem [shape: f32[3,32], index: 7, kind: input, shape index: {}]   ;;  %s4297_s8 = inlined_call_operand.vmem [shape: f32[1,32], index: 8, kind: input, shape index: {}]   ;;  %s4298_s9 = inlined_call_operand.vmem [shape: bf16[32,5], index: 9, kind: input, shape index: {}]   ;;  %s4299_s10 = inlined_call_operand.vmem [shape: f32[1,5], index: 10, kind: input, shape index: {}]   ;;  %s4300_s11 = inlined_call_operand.vmem [shape: f32[16,16,5], index: 11, kind: output, shape index: {}]  }
   0x1   :  { %4306 = sst [smem:[#allocation12_spill]] %s4294_s5 }
   0x2   :  { %4307 = sst [smem:[#allocation13_spill]] %s4298_s9 }
   0x3   :  { %4308 = sst [smem:[#allocation14_spill]] %s4299_s10 }
   0x4   :  { %4309 = sst [smem:[#allocation15_spill]] %s4300_s11 }
   0x5   :  { %16 = vsyncpa [#allocation3], 0 }
   0x6   :  { %18 = vsyncpa [#allocation3 + $0x1], 0 }
   0x7   :  { %19 = vsyncpa [#allocation5], 0  ;;  %s3413_s17 = smov 0   ;;  %s3415_s18 = smov 0  }
   0x8   :  { %s3417_s19 = smov 0   ;;  %s3419_s20 = smov 0  }
   0x9   :  { %s3421_s21 = smov 0   ;;  %s3423_s22 = smov 0  }
   0xa LB: > { %s2745_s23 = sadd.s32 4294967295, %s3341_s22   ;;  %p163_p0 = scmp.ne.s32.totalorder %s3325_s18, %s3321_s17  ;;  %s3341_s22 = sphi %s3423_s22, %s25_s22   ;;  %s3337_s21 = sphi %s3421_s21, %s4331_s21   ;;  %s3333_s20 = sphi %s3419_s20, %s4330_s20   ;;  %s3329_s19 = sphi %s3417_s19, %s4329_s19   ;;  %s3325_s18 = sphi %s3415_s18, %s4328_s18   ;;  %s3321_s17 = sphi %s3413_s17, %s4327_s17  }
   0xb   : > { %p3443_p1 = scmp.eq.s32.totalorder %s2745_s23, 0  ;;  %p2747_p2 = scmp.ge.s32.totalorder %s3341_s22, 1 }
   0xc   : > { %p328_p3 = scmp.lt.s32.totalorder %s3341_s22, 3  ;;  %s3343_s27 = smov [#allocation4]  }
   0xd   : > { %p3451_p4 = por %p3443_p1, %p163_p0  ;;  %s358_s28 = sshll.u32 %s3343_s27, 4  ;;  %s359_s28 = int_to_ptr.vmem [resolvable:$true] %s358_s28 }
   0xe   : > { %p3455_p5 = pnand %p2747_p2, %p328_p3  ;;  %s37_s30 = sadd.s32 1, %s3337_s21 }
   0xf   : > { %s3244_s12 = scalar_lea.vmem %s359_s28, 1536  ;;  %p3252_p12 = scmp.lt.s32.totalorder %s359_s28, %s359_s28 }
  0x10   : > { %p3067_p6 = pneg %p3455_p5  ;;  %p3245_p9 = scmp.ne.s32.totalorder %s359_s28, %s3244_s12 }
  0x11   : > { %p3253_p13 = scmp.lt.s32.totalorder %s3244_s12, %s3244_s12 }
  0x12   : > { %p3463_p7 = pnand %p3067_p6, %p3443_p1 }
  0x13   : > { %p3254_p0 = por %p3253_p13, %p3252_p12 }
  0x14   : > { %p3235_p8 = pneg %p3463_p7 }
  0x16   : > { %p3247_p10 = pnand %p3245_p9, %p3235_p8 }
  0x18   : > { %p3248_p11 = pneg %p3247_p10 }
  0x1a   : > { %p3255_p2 = pnand %p3254_p0, %p3248_p11 }
  0x1c   : > { %3258 = shalt.err (!%p3255_p2)
}
  0x1d   : > { %s3344_s13 = smov 64   ;;  %s3345_s14 = smov 4  }
  0x1e   : > { %s4314_s5 = sld [smem:[#allocation12_spill]]  ;;  %p39_p3 = scmp.ge.s32.totalorder %s37_s30, 2 }
  0x1f   : > { %s150_s17 = sadd.s32 1, %s3329_s19  ;;  %p157_p6 = scmp.ne.s32.totalorder %s3329_s19, %s3325_s18 }
  0x20   : > { %p158_p8 = scmp.eq.s32.totalorder %s3341_s22, 0  ;;  %s4333_s30 = smov (%p39_p3, %s37_s30), 0 }
  0x21   : > { %p3076_p10 = scmp.lt.s32.totalorder %s3341_s22, 2  ;;  %s145_s23 = ssub.s32 %s3337_s21, %s4333_s30 }
  0x22   : > { %p159_p9 = por %p158_p8, %p157_p6  ;;  %s401_s27 = sand.u32 1, %s3329_s19  }
  0x23   : > { %p148_p11 = scmp.eq.s32.totalorder %s145_s23, 0  ;;  %s2752_s12 = sshll.u32 %s401_s27, 7 }
  0x24   : > { %3070 = dma.hbm_to_vmem [thread:$0]  (!%p3463_p7), %s4314_s5, 1536, %s359_s28, [#allocation5], %s3344_s13, %s3344_s13, %s3345_s14  }
  0x25   : > { %s2845_s11 = sshll.u32 %s3337_s21, 11  ;;  %s405_s13 = scalar_lea.vmem [#allocation2], %s2752_s12 }
  0x26   : > { %s3487_s10 = scalar_select %p148_p11, %s3329_s19, %s150_s17  }
  0x27   : > { %s414_s28 = scalar_lea.hbm %s4293_s4, %s2845_s11  ;;  %s415_s14 = sshll.u32 %s405_s13, 4  ;;  %s416_s14 = int_to_ptr.vmem [resolvable:$true] %s415_s14 }
  0x28   : > { %p3492_p7 = pnand %p3076_p10, %p159_p9  ;;  %s402_s16 = scalar_lea.sflag [#allocation3], %s401_s27 }
  0x29   : > { %s3272_s23 = scalar_lea.vmem %s416_s14, 2048  ;;  %s3346_s17 = smov [#allocation2]  }
  0x2a   : > { %p3261_p12 = pneg %p3492_p7  ;;  %p3273_p13 = scmp.ne.s32.totalorder %s416_s14, %s3272_s23 }
  0x2b   : > { %s3277_s5 = sshll.u32 %s3346_s17, 4  ;;  %s3278_s5 = int_to_ptr.vmem [resolvable:$false] %s3277_s5 }
  0x2c   : > { %p3275_p0 = pnand %p3273_p13, %p3261_p12  ;;  %s3279_s9 = scalar_lea.vmem %s3278_s5, 4096 }
  0x2d   : > { %p3280_p3 = scmp.lt.s32.totalorder %s416_s14, %s3278_s5  ;;  %p3281_p6 = scmp.lt.s32.totalorder %s3279_s9, %s3272_s23 }
  0x2e   : > { %p3276_p2 = pneg %p3275_p0 }
  0x2f   : > { %p3282_p8 = por %p3281_p6, %p3280_p3 }
  0x31   : > { %p3283_p9 = pnand %p3282_p8, %p3276_p2 }
  0x33   : > { %3286 = shalt.err (!%p3283_p9)
}
  0x34   : > { %s3347_s11 = smov 128   ;;  %s3348_s12 = smov 8  }
  0x35   : > { %3074 = dma.hbm_to_vmem [thread:$0]  (!%p3492_p7), %s414_s28, 2048, %s416_s14, %s402_s16, %s3347_s11, %s3347_s11, %s3348_s12  }
  0x36   : > { %427 = sbr.rel (%p3455_p5) target bundleno = 1658 (0x67a), region = 64 }
  0x3b   : > { %s429_s27 = sand.u32 1, %s3325_s18  }
  0x3c   : > { %s2757_s29 = sshll.u32 %s429_s27, 7  ;;  %s430_s13 = scalar_lea.sflag [#allocation3], %s429_s27 }
  0x3d   : > { %s3503_s17 = scalar_lea.vmem [#allocation2], %s2757_s29 }
  0x3e   : > { %3312 = dma.done.wait (%p3451_p4), %s430_s13, 2048  }
  0x3f   : > { %3314 = vsyncadd (%p3451_p4), %s430_s13, 4294965248 }
  0x40   : > { %3316 = dma.done.wait (%p3443_p1), [#allocation5], 1536  }
  0x41   : > { %3318 = vsyncadd (%p3443_p1), [#allocation5], 4294965760  ;;  %p505_p5 = scmp.lt.s32.totalorder %s3333_s20, 1  ;;  %v3349_v0 = vmov 1   ;;  %v3350_v1 = vmov 2   ;;  %v542_v4 = vlaneseq  ;;  %v3153_v5 = vld [vmem:[#allocation4 + $0x8] sm:$0xff]  }
  0x42   : > { %3135 = vset.pattern.permute.xlu1 %v3349_v0  ;;  %3137 = vset.pattern.permute.xlu0 %v3350_v1  ;;  %v3351_v2 = vmov 1966171168   ;;  %v3154_v8 = vld [vmem:[#allocation4] sm:$0xff]   ;;  %v679_v10 = vld [vmem:[%s3503_s17 + $0x8] sm:$0xff]  ;;  %vm714_vm0 = vcmask 261120   ;;  %v680_v12 = vld [vmem:[%s3503_s17 + $0x10] sm:$0xff] }
  0x43   : > { %v540_v3 = vunpack.c.l.s4 %v3351_v2  ;;  %s3517_s5 = scalar_select %p505_p5, %s3333_s20, 1  ;;  %v3519_v7 = vshrl.u32 %v542_v4, 7  ;;  %2917 = vmatprep.subr.bf16.mxu0 %v3153_v5  ;;  %v678_v9 = vld [vmem:[%s3503_s17] sm:$0xff]  ;;  %3057 = vmatprep.subr.bf16.mxu1 %v3153_v5  ;;  %v681_v13 = vld [vmem:[%s3503_s17 + $0x18] sm:$0xff]  ;;  %v683_v15 = vld [vmem:[%s3503_s17 + $0x28] sm:$0xff]  ;;  %v3352_v4 = vmov 0  }
  0x44   : > { %2918 = vmatpush3.bf16.msra.mxu0 %v3153_v5  ;;  %v694_v11 = vpack.c.bf16 %v679_v10, %v678_v9  ;;  %3059 = vmatpush3.bf16.msra.mxu1 %v3153_v5  ;;  %v682_v14 = vld [vmem:[%s3503_s17 + $0x20] sm:$0xff]  ;;  %v687_v18 = vld [vmem:[%s3503_s17 + $0x48] sm:$0xff]  ;;  %v688_v19 = vld [vmem:[%s3503_s17 + $0x50] sm:$0xff]  ;;  %v695_v21 = vpack.c.bf16 %v681_v13, %v680_v12  ;;  %s4324_s13 = sld [smem:[#allocation13_spill]]  ;;  %vm2374_vm1 = vcmask 39936   ;;  %s2761_s23 = sshll.u32 %s3333_s20, 3 }
  0x45   : > { %v541_v6 = vunpack.c.0.s8 %v540_v3  ;;  %s2759_s24 = sshll.u32 %s3517_s5, 3  ;;  %2919 = vmatprep.subr.bf16.mxu0 %v3154_v8  ;;  %3058 = vmatprep.subr.bf16.mxu1 %v3154_v8  ;;  %v686_v16 = vld [vmem:[%s3503_s17 + $0x40] sm:$0xff]  ;;  %v689_v20 = vld [vmem:[%s3503_s17 + $0x58] sm:$0xff]  ;;  %v691_v25 = vld [vmem:[%s3503_s17 + $0x68] sm:$0xff]  ;;  %v696_v26 = vpack.c.bf16 %v683_v15, %v682_v14  ;;  %v3545_v29 = vsub.s32 0, %v3519_v7  ;;  %s4325_s16 = sld [smem:[#allocation14_spill]] }
  0x46   : > { %s512_s28 = scalar_lea.vmem %s4291_s2, %s2759_s24  ;;  %2921 = vmatprep.mubr.msk.bf16.mxu0 %vm714_vm0, %v694_v11  ;;  %v698_v22 = vpack.c.bf16 %v687_v18, %v686_v16  ;;  %v699_v23 = vpack.c.bf16 %v689_v20, %v688_v19  ;;  %v690_v24 = vld [vmem:[%s3503_s17 + $0x60] sm:$0xff]  ;;  %v684_v32 = vld [vmem:[%s3503_s17 + $0x30] sm:$0xff]  ;;  %v685_v33 = vld [vmem:[%s3503_s17 + $0x38] sm:$0xff]  ;;  %p523_p1 = scmp.lt.s32.totalorder %s2761_s23, 15 }
  0x47   : > { %v3535_v17 = vsub.s32 %v541_v6, %v3519_v7  ;;  %v700_v27 = vpack.c.bf16 %v691_v25, %v690_v24  ;;  %v1226_v28 = vld [vmem:[%s512_s28] sm:$0xff]  ;;  %v692_v34 = vld [vmem:[%s3503_s17 + $0x70] sm:$0xff]  ;;  %v3156_v35 = vld [vmem:[#allocation4 + $0x18] sm:$0xff]   ;;  %v697_v45 = vpack.c.bf16 %v685_v33, %v684_v32  ;;  %s4326_s27 = sld [smem:[#allocation15_spill]] }
  0x48   : > { %2920 = vmatpush3.bf16.msra.mxu0 %v3154_v8  ;;  %3060 = vmatpush3.bf16.msra.mxu1 %v3154_v8  ;;  %v1230_v31 = vcombine.high %v1226_v28, %v1226_v28  ;;  %v693_v36 = vld [vmem:[%s3503_s17 + $0x78] sm:$0xff]  ;;  %v3557_v37 = vld [vmem:[%s4292_s3 + $0x8] sm:$0xff]  ;;  %v3565_v40 = vld [vmem:[%s4292_s3] sm:$0xff]  ;;  %s508_s17 = scalar_lea.vmem %s4290_s1, %s2759_s24  ;;  %s4335_s23 = smov (!%p523_p1, %s2761_s23), 15 }
  0x49   : > { %2929 = vmatprep.mubr.msk.bf16.mxu1 %vm714_vm0, %v698_v22  ;;  %v1237_v30 = vrot.slane %v1226_v28, %v3535_v17  ;;  %2937 = vmatprep.subr.bf16.mxu1 %v3156_v35  ;;  %v701_v46 = vpack.c.bf16 %v693_v36, %v692_v34  ;;  %v3615_v34 = vld [vmem:[#allocation4 + $0x38] sm:$0xff]   ;;  %v1541_v36 = vsub.s32 1, %v3519_v7  ;;  %s2846_s9 = sshll.u32 %s4335_s23, 4 }
  0x4a   : > { %v1244_v41 = vrot.slane %v1230_v31, %v3535_v17 }
  0x4b   : > { %2922 = vmatmul.mubr.msk.bf16.vlgmr.msra.gmra.mxu0 %vm714_vm0, %v695_v21  ;;  %2930 = vmatmul.mubr.msk.bf16.vlgmr.msra.gmra.mxu1 %vm714_vm0, %v699_v23  ;;  %v1253_v38 = vrot.slane %v1237_v30, %v3535_v17  ;;  %v1245_v39 = vcombine.high %v1237_v30, %v1237_v30  ;;  %v3157_v30 = vld [vmem:[#allocation4 + $0x10] sm:$0xff]  }
  0x4c   : > { %2925 = vmatprep.mubr.msk.bf16.mxu0 %vm714_vm0, %v696_v26  ;;  %2933 = vmatprep.mubr.msk.bf16.mxu1 %vm714_vm0, %v700_v27  ;;  %v1260_v50 = vrot.slane %v1244_v41, %v3535_v17  ;;  %v1246_v6 = vcombine.high %v1244_v41, %v1244_v41 }
  0x4d   : > { %v1282_v42 = vrot.slane %v1253_v38, %v3545_v29  ;;  %v1275_v43 = vcombine.high %v1253_v38, %v1253_v38  ;;  %v1267_v44 = vrot.slane %v1245_v39, %v3535_v17  ;;  %2938 = vmatpush3.bf16.msra.mxu1 %v3156_v35  ;;  %v1641_v39 = vsub.s32 2, %v3519_v7  ;;  %s4221_s20 = scalar_lea.vmem %s4326_s27, %s2846_s9 }
  0x4e   : > { %v1298_v58 = vrot.slane %v1260_v50, %v3545_v29  ;;  %v1276_v8 = vcombine.high %v1260_v50, %v1260_v50  ;;  %v1274_v9 = vrot.slane %v1246_v6, %v3535_v17  ;;  %2939 = vmatprep.subr.bf16.mxu1 %v3157_v30 }
  0x4f   : > { %v1320_v47 = vsub.f32 %v1282_v42, %v3557_v37  ;;  %v1290_v48 = vrot.slane %v1275_v43, %v3545_v29  ;;  %v1277_v49 = vcombine.high %v1267_v44, %v1267_v44  ;;  %v1319_v52 = vsub.f32 %v1282_v42, %v3565_v40 }
  0x50   : > { %v1286_v53 = vrot.slane %v1267_v44, %v3545_v29  ;;  %v1328_v62 = vsub.f32 %v1298_v58, %v3557_v37  ;;  %v1306_v11 = vrot.slane %v1276_v8, %v3545_v29  ;;  %v1278_v12 = vcombine.high %v1274_v9, %v1274_v9 }
  0x51   : > { %v1336_v51 = vmax.f32 %v1320_v47, 0.0  ;;  %v1323_v54 = vsub.f32 %v1290_v48, %v3565_v40  ;;  %v1294_v55 = vrot.slane %v1277_v49, %v3545_v29  ;;  %v1335_v59 = vmax.f32 %v1319_v52, 0.0  ;;  %2940 = vmatpush3.bf16.msra.mxu1 %v3157_v30 }
  0x52   : > { %v1321_v60 = vsub.f32 %v1286_v53, %v3565_v40  ;;  %v1322_v2 = vsub.f32 %v1286_v53, %v3557_v37  ;;  %v3585_v3 = vmax.f32 %v1328_v62, 0.0  ;;  %v1324_v10 = vsub.f32 %v1290_v48, %v3557_v37  ;;  %2977 = vmatprep.subr.bf16.mxu1 %v3615_v34 }
  0x53   : > { %2926 = vmatmul.mubr.msk.bf16.gmra.mxu0 %vm714_vm0, %v697_v45  ;;  %2934 = vmatmul.mubr.msk.bf16.gmra.mxu1 %vm714_vm0, %v701_v46  ;;  %v1339_v56 = vmax.f32 %v1323_v54, 0.0  ;;  %v1326_v57 = vsub.f32 %v1294_v55, %v3557_v37  ;;  %v1325_v14 = vsub.f32 %v1294_v55, %v3565_v40  ;;  %v1331_v15 = vsub.f32 %v1306_v11, %v3565_v40  ;;  %v3161_v46 = vld [vmem:[#allocation4 + $0x28] sm:$0xff]  }
  0x54   : > { %1480 = vperm.xlu1 %3135, %v1336_v51   ;;  %1580 = vperm.xlu0 %3137, %v1336_v51   ;;  %v1337_v63 = vmax.f32 %v1321_v60, 0.0  ;;  %v1338_v5 = vmax.f32 %v1322_v2, 0.0  ;;  %v1340_v13 = vmax.f32 %v1324_v10, 0.0  ;;  %v1310_v16 = vrot.slane %v1278_v12, %v3545_v29  ;;  %v536_v12 = vld [vmem:[%s508_s17] sm:$0xff] }
  0x55   : > { %v1342_v61 = vmax.f32 %v1326_v57, 0.0  ;;  %v1341_v18 = vmax.f32 %v1325_v14, 0.0  ;;  %v1347_v19 = vmax.f32 %v1331_v15, 0.0  ;;  %v1327_v22 = vsub.f32 %v1298_v58, %v3565_v40  ;;  %2957 = vmatprep.subr.bf16.mxu0 %v3161_v46 }
  0x56   : > { %v1334_v20 = vsub.f32 %v1310_v16, %v3557_v37  ;;  %v1302_v23 = vrot.slane %v1274_v9, %v3545_v29  ;;  %v1332_v31 = vsub.f32 %v1306_v11, %v3557_v37  ;;  %v1333_v33 = vsub.f32 %v1310_v16, %v3565_v40  ;;  %2958 = vmatpush3.bf16.msra.mxu0 %v3161_v46 }
  0x57   : > { %v1343_v24 = vmax.f32 %v1327_v22, 0.0  ;;  %v545_v16 = vrot.slane %v536_v12, %v3535_v17 }
  0x58   : > { %3136 = vset.pattern.permute.xlu1 %v3350_v1  ;;  %1592 = vperm.xlu0 %3137, %v1339_v56   ;;  %v1350_v21 = vmax.f32 %v1334_v20, 0.0  ;;  %v1330_v25 = vsub.f32 %v1302_v23, %v3557_v37  ;;  %v1329_v26 = vsub.f32 %v1302_v23, %v3565_v40  ;;  %v1348_v32 = vmax.f32 %v1332_v31, 0.0  ;;  %v1351_v37 = vld [vmem:[%s4296_s7] sm:$0x7] }
  0x59   : > { %1576 = vperm.xlu1 %3136, %v1335_v59   ;;  %v1349_v35 = vmax.f32 %v1333_v33, 0.0  ;;  %v3624_v38 = vrot.slane %v1351_v37, %v1541_v36  ;;  %v3629_v42 = vrot.slane %v1351_v37, %v1641_v39  ;;  %v3637_v7 = vrot.slane %v1351_v37, %v3545_v29 }
  0x5a   : > { %v1346_v27 = vmax.f32 %v1330_v25, 0.0  ;;  %v1345_v28 = vmax.f32 %v1329_v26, 0.0  ;;  %v553_v23 = vcombine.high %v545_v16, %v545_v16  ;;  %v561_v26 = vrot.slane %v545_v16, %v3535_v17 }
  0x5c   : > { %1604 = vperm.xlu0 %3137, %v1342_v61   ;;  %v575_v36 = vrot.slane %v553_v23, %v3535_v17 }
  0x5d   : > { %3138 = vset.pattern.permute.xlu1 %v3352_v4 }
  0x5e   : > { %1365 = vperm.xlu1 %3138, %v1337_v63  }
  0x60   : > { %1612 = vperm.xlu0 %3137, %v3585_v3  }
  0x62   : > { %1370 = vperm.xlu1 %3138, %v1338_v5  }
  0x64   : > { %3147 = vset.pattern.permute.xlu0 %v3352_v4 }
  0x65   : > { %1355 = vperm.xlu0 %3147, %v1335_v59  }
  0x66   : > { %3139 = vset.pattern.permute.xlu1 %v3349_v0 }
  0x67   : > { %1484 = vperm.xlu1 %3139, %v1337_v63  }
  0x69   : > { %1360 = vperm.xlu0 %3147, %v1336_v51   ;;  %v3645_v51 = vld [vmem:[%s4297_s8] ss:$0 sm:$0xff] }
  0x6b   : > { %3140 = vset.pattern.permute.xlu1 %v3350_v1 }
  0x6c   : > { %1584 = vperm.xlu1 %3140, %v1337_v63  }
  0x6d   : > { %1375 = vperm.xlu0 %3147, %v1339_v56  }
  0x70   : > { %1588 = vperm.xlu1 %3140, %v1338_v5  }
  0x71   : > { %1390 = vperm.xlu0 %3147, %v1342_v61  }
  0x74   : > { %3141 = vset.pattern.permute.xlu1 %v3352_v4 }
  0x75   : > { %1380 = vperm.xlu1 %3141, %v1340_v13   ;;  %1400 = vperm.xlu0 %3147, %v3585_v3  }
  0x79   : > { %1385 = vperm.xlu1 %3141, %v1341_v18   ;;  %1415 = vperm.xlu0 %3147, %v1347_v19  }
  0x7d   : > { %3142 = vset.pattern.permute.xlu1 %v3349_v0  ;;  %1430 = vperm.xlu0 %3147, %v1350_v21  }
  0x7e   : > { %1492 = vperm.xlu1 %3142, %v1339_v56  }
  0x81   : > { %3149 = vset.pattern.permute.xlu0 %v3349_v0 }
  0x82   : > { %1500 = vperm.xlu1 %3142, %v1341_v18   ;;  %1476 = vperm.xlu0 %3149, %v1335_v59  }
  0x86   : > { %1504 = vperm.xlu1 %3142, %v1342_v61   ;;  %1488 = vperm.xlu0 %3149, %v1338_v5  }
  0x8a   : > { %3143 = vset.pattern.permute.xlu1 %v3350_v1  ;;  %1496 = vperm.xlu0 %3149, %v1340_v13  }
  0x8b   : > { %1596 = vperm.xlu1 %3143, %v1340_v13  }
  0x8e   : > { %1508 = vperm.xlu0 %3149, %v1343_v24  }
  0x8f   : > { %1600 = vperm.xlu1 %3143, %v1341_v18  }
  0x92   : > { %1520 = vperm.xlu0 %3149, %v1346_v27  }
  0x93   : > { %3144 = vset.pattern.permute.xlu1 %v3352_v4 }
  0x94   : > { %1395 = vperm.xlu1 %3144, %v1343_v24  }
  0x96   : > { %1528 = vperm.xlu0 %3149, %v1348_v32  }
  0x98   : > { %1405 = vperm.xlu1 %3144, %v1345_v28  }
  0x9a   : > { %3151 = vset.pattern.permute.xlu0 %v3350_v1 }
  0x9b   : > { %1624 = vperm.xlu0 %3151, %v1347_v19  }
  0x9c   : > { %1410 = vperm.xlu1 %3144, %v1346_v27  }
  0x9f   : > { %1636 = vperm.xlu0 %3151, %v1350_v21  }
  0xa0   : > { %3145 = vset.pattern.permute.xlu1 %v3349_v0 }
  0xa1   : > { %1512 = vperm.xlu1 %3145, %v3585_v3  }
  0xa5   : > { %1516 = vperm.xlu1 %3145, %v1345_v28  }
  0xa9   : > { %3146 = vset.pattern.permute.xlu1 %v3350_v1 }
  0xaa   : > { %1608 = vperm.xlu1 %3146, %v1343_v24  }
  0xae   : > { %1616 = vperm.xlu1 %3146, %v1345_v28  }
  0xb2   : > { %1620 = vperm.xlu1 %3146, %v1346_v27   ;;  %v538_v27 = vcombine.high %v536_v12, %v536_v12 }
  0xb6   : > { %3148 = vset.pattern.permute.xlu1 %v3352_v4 }
  0xb7   : > { %1420 = vperm.xlu1 %3148, %v1348_v32  }
  0xbb   : > { %1425 = vperm.xlu1 %3148, %v1349_v35  }
  0xbf   : > { %3150 = vset.pattern.permute.xlu1 %v3349_v0 }
  0xc0   : > { %1524 = vperm.xlu1 %3150, %v1347_v19  }
  0xc4   : > { %1532 = vperm.xlu1 %3150, %v1349_v35  }
  0xc8   : > { %1536 = vperm.xlu1 %3150, %v1350_v21  }
  0xcc   : > { %3152 = vset.pattern.permute.xlu1 %v3350_v1 }
  0xcd   : > { %1628 = vperm.xlu1 %3152, %v1348_v32  }
  0xcf   : > { %v1481_v40 = vpop.permute.xlu1 %1480  ;;  %v1581_v41 = vpop.permute.xlu0 %1580 }
  0xd0   : > { %v1544_v0 = vmul.f32 %v3624_v38, %v1481_v40  ;;  %v1644_v59 = vmul.f32 %v3629_v42, %v1581_v41  ;;  %v552_v40 = vrot.slane %v538_v27, %v3535_v17  ;;  %v590_v41 = vrot.slane %v561_v26, %v3545_v29 }
  0xd1   : > { %1632 = vperm.xlu1 %3152, %v1349_v35  }
  0xd3   : > { %v3631_v43 = vpop.permute.xlu0 %1592 }
  0xd4   : > { %v1577_v44 = vpop.permute.xlu1 %1576 }
  0xd5   : > { %v1643_v45 = vmul.f32 %v3629_v42, %v1577_v44 }
  0xd7   : > { %v3634_v47 = vpop.permute.xlu0 %1604 }
  0xd9   : > { %v1366_v1 = vpop.permute.xlu1 %1365 }
  0xda   : > { %v1439_v49 = vmul.f32 %v3637_v7, %v1366_v1 }
  0xdb   : > { %v3639_v48 = vpop.permute.xlu0 %1612 }
  0xdc   : > { %v1461_v53 = vadd.f32 %v3645_v51, %v1439_v49  ;;  %v594_v49 = vrot.slane %v575_v36, %v3545_v29 }
  0xdd   : > { %v1371_v50 = vpop.permute.xlu1 %1370 }
  0xde   : > { %v1440_v18 = vmul.f32 %v3637_v7, %v1371_v50  ;;  %v3699_v50 = vld [vmem:[%s4289_s0] sm:$0xff] }
  0xe0   : > { %v1356_v52 = vpop.permute.xlu0 %1355  ;;  %v1462_v24 = vadd.f32 %v3645_v51, %v1440_v18 }
  0xe1   : > { %v1437_v13 = vmul.f32 %v3637_v7, %v1356_v52 }
  0xe2   : > { %v1485_v54 = vpop.permute.xlu1 %1484 }
  0xe3   : > { %v1545_v55 = vmul.f32 %v3624_v38, %v1485_v54  ;;  %v1459_v19 = vadd.f32 %v3645_v51, %v1437_v13  ;;  %v3707_v54 = vadd.f32 %v590_v41, %v3699_v50 }
  0xe4   : > { %v1361_v56 = vpop.permute.xlu0 %1360 }
  0xe5   : > { %v1561_v57 = vadd.f32 %v1545_v55, %v1461_v53  ;;  %v1438_v58 = vmul.f32 %v3637_v7, %v1361_v56  ;;  %v3704_v53 = vld [vmem:[%s4289_s0 + $0x8] sm:$0xff]  ;;  %v583_v55 = vcombine.high %v561_v26, %v561_v26 }
  0xe6   : > { %v3724_v13 = vadd.f32 %v590_v41, %v3704_v53 }
  0xe7   : > { %v1585_v60 = vpop.permute.xlu1 %1584  ;;  %v1460_v61 = vadd.f32 %v3645_v51, %v1438_v58  ;;  %v3714_v58 = vadd.f32 %v594_v49, %v3699_v50  ;;  %v598_v16 = vrot.slane %v583_v55, %v3545_v29 }
  0xe8   : > { %v1645_v62 = vmul.f32 %v3629_v42, %v1585_v60  ;;  %v3653_v63 = vpop.permute.xlu0 %1375  ;;  %v585_v60 = vcombine.high %v575_v36, %v575_v36 }
  0xe9   : > { %v1560_v2 = vadd.f32 %v1544_v0, %v1460_v61 }
  0xea   : > { %v1661_v3 = vadd.f32 %v1645_v62, %v1561_v57 }
  0xeb   : > { %v1589_v4 = vpop.permute.xlu1 %1588  ;;  %v1660_v5 = vadd.f32 %v1644_v59, %v1560_v2  ;;  %v3720_v2 = vadd.f32 %v594_v49, %v3704_v53 }
  0xec   : > { %v3655_v6 = vpop.permute.xlu0 %1390  ;;  %v1646_v31 = vmul.f32 %v3629_v42, %v1589_v4  ;;  %v1677_v0 = vmax.f32 %v1661_v3, 0.0  ;;  %v554_v4 = vcombine.high %v552_v40, %v552_v40 }
  0xed   : > { %v1676_v32 = vmax.f32 %v1660_v5, 0.0 }
  0xf0   : > { %v3657_v8 = vpop.permute.xlu1 %1380  ;;  %v3659_v9 = vpop.permute.xlu0 %1400 }
  0xf4   : > { %v3661_v10 = vpop.permute.xlu1 %1385  ;;  %v3663_v11 = vpop.permute.xlu0 %1415 }
  0xf8   : > { %v3671_v14 = vpop.permute.xlu0 %1430 }
  0xf9   : > { %v3673_v15 = vpop.permute.xlu1 %1492 }
  0xfd   : > { %v3678_v20 = vpop.permute.xlu1 %1500  ;;  %v1477_v21 = vpop.permute.xlu0 %1476 }
  0xfe   : > { %v1543_v22 = vmul.f32 %v3624_v38, %v1477_v21  ;;  %v602_v21 = vrot.slane %v585_v60, %v3545_v29 }
 0x100   : > { %v1559_v25 = vadd.f32 %v1543_v22, %v1459_v19  ;;  %v3754_v41 = vadd.f32 %v602_v21, %v3699_v50 }
 0x101   : > { %v3683_v28 = vpop.permute.xlu1 %1504  ;;  %v1489_v30 = vpop.permute.xlu0 %1488 }
 0x102   : > { %v1659_v33 = vadd.f32 %v1643_v45, %v1559_v25  ;;  %v1546_v35 = vmul.f32 %v3624_v38, %v1489_v30  ;;  %v568_v45 = vrot.slane %v552_v40, %v3535_v17  ;;  %v3737_v25 = vld [vmem:[%s4295_s6] ss:$0 sm:$0xff] }
 0x104   : > { %v1675_v37 = vmax.f32 %v1659_v33, 0.0  ;;  %v1562_v39 = vadd.f32 %v1546_v35, %v1462_v24  ;;  %v606_v62 = vrot.slane %v568_v45, %v3545_v29  ;;  %v584_v24 = vcombine.high %v568_v45, %v568_v45 }
 0x106   : > { %v3690_v44 = vpop.permute.xlu1 %1596  ;;  %v3692_v46 = vpack.c.bf16 %v1676_v32, %v1675_v37  ;;  %v1662_v1 = vadd.f32 %v1646_v31, %v1562_v39  ;;  %v3730_v22 = vadd.f32 %v606_v62, %v3699_v50  ;;  %v3741_v27 = vadd.f32 %v606_v62, %v3704_v53 }
 0x107   : > { %v582_v32 = vrot.slane %v554_v4, %v3535_v17  ;;  %v3750_v39 = vadd.f32 %v598_v16, %v3699_v50  ;;  %v614_v17 = vrot.slane %v584_v24, %v3545_v29  ;;  %v3769_v4 = vadd.f32 %v598_v16, %v3704_v53 }
 0x108   : > { %v1678_v52 = vmax.f32 %v1662_v1, 0.0  ;;  %4316 = vst [vmem:[#allocation8_spill] sm:$0xff] %v3730_v22  ;;  %4317 = vst [vmem:[#allocation9_spill] sm:$0xff] %v3741_v27 }
 0x109   : > { %4318 = vst [vmem:[#allocation10_spill] sm:$0xff] %v3750_v39  ;;  %v586_v24 = vcombine.high %v582_v32, %v582_v32 }
 0x10a   : > { %v3709_v56 = vpop.permute.xlu1 %1600  ;;  %v3711_v57 = vpack.c.bf16 %v1678_v52, %v1677_v0  ;;  %v3762_v52 = vadd.f32 %v602_v21, %v3704_v53 }
 0x10b   : > { %v2923_v59 = vpop.f32.mrf.mxu0  ;;  %v3716_v61 = vpop.f32.mrf.mxu1 }
 0x10c   : > { %v838_v18 = vadd.f32 %v2923_v59, %v3714_v58  ;;  %4319 = vst [vmem:[#allocation11_spill] sm:$0xff] %v3762_v52 }
 0x10d   : > { %v773_v3 = vpop.f32.mrf.mxu0  ;;  %v805_v5 = vpop.f32.mrf.mxu1 }
 0x10e   : > { %v836_v12 = vadd.f32 %v773_v3, %v3707_v54  ;;  %v858_v40 = vadd.f32 %v3737_v25, %v838_v18  ;;  %v844_v1 = vadd.f32 %v805_v5, %v3730_v22  ;;  %v610_v3 = vrot.slane %v582_v32, %v3545_v29 }
 0x10f   : > { %v2924_v19 = vpop.f32.mrf.mxu0  ;;  %v3732_v23 = vpop.f32.mrf.mxu1 }
 0x110   : > { %v839_v26 = vadd.f32 %v2924_v19, %v3720_v2  ;;  %v3743_v30 = vpop.permute.xlu1 %1395  ;;  %v856_v35 = vadd.f32 %v3737_v25, %v836_v12 }
 0x111   : > { %v776_v31 = vpop.f32.mrf.mxu0  ;;  %v808_v33 = vpop.f32.mrf.mxu1 }
 0x112   : > { %v859_v36 = vadd.f32 %v3737_v25, %v839_v26  ;;  %v837_v37 = vadd.f32 %v776_v31, %v3724_v13  ;;  %v845_v55 = vadd.f32 %v808_v33, %v3741_v27  ;;  %v872_v12 = vmax.f32 %v856_v35, 0.0 }
 0x113   : > { %v2927_v0 = vpop.f32.mrf.mxu0  ;;  %v3757_v49 = vpop.f32.mrf.mxu1  ;;  %v874_v26 = vmax.f32 %v858_v40, 0.0  ;;  %v864_v33 = vadd.f32 %v3737_v25, %v844_v1  ;;  %v3780_v35 = vadd.f32 %v614_v17, %v3704_v53  ;;  %v3785_v40 = vadd.f32 %v610_v3, %v3699_v50 }
 0x114   : > { %v857_v45 = vadd.f32 %v3737_v25, %v837_v37  ;;  %v3765_v59 = vpop.permute.xlu1 %1405  ;;  %v875_v60 = vmax.f32 %v859_v36, 0.0  ;;  %v842_v21 = vadd.f32 %v2927_v0, %v3754_v41  ;;  %v3775_v36 = vadd.f32 %v614_v17, %v3699_v50 }
 0x115   : > { %v789_v62 = vpop.f32.mrf.mxu0  ;;  %v821_v5 = vpop.f32.mrf.mxu1  ;;  %v865_v22 = vadd.f32 %v3737_v25, %v845_v55  ;;  %v3788_v1 = vadd.f32 %v610_v3, %v3704_v53 }
 0x116   : > { %v873_v18 = vmax.f32 %v857_v45, 0.0  ;;  %v840_v19 = vadd.f32 %v789_v62, %v3750_v39  ;;  %v889_v32 = vpack.c.bf16 %v875_v60, %v874_v26  ;;  %v3160_v39 = vld [vmem:[#allocation4 + $0x30] sm:$0xff]   ;;  %v862_v17 = vadd.f32 %v3737_v25, %v842_v21 }
 0x117   : > { %v2928_v31 = vpop.f32.mrf.mxu0  ;;  %v2936_v37 = vpop.f32.mrf.mxu1  ;;  %v880_v60 = vmax.f32 %v864_v33, 0.0  ;;  %v618_v26 = vrot.slane %v586_v24, %v3545_v29  ;;  %v847_v21 = vadd.f32 %v3732_v23, %v3788_v1 }
 0x118   : > { %v888_v27 = vpack.c.bf16 %v873_v18, %v872_v12  ;;  %v843_v16 = vadd.f32 %v2928_v31, %v3762_v52  ;;  %v3782_v45 = vpop.permute.xlu1 %1410  ;;  %v860_v12 = vadd.f32 %v3737_v25, %v840_v19  ;;  %v881_v31 = vmax.f32 %v865_v22, 0.0 }
 0x119   : > { %v792_v0 = vpop.f32.mrf.mxu0  ;;  %v824_v62 = vpop.f32.mrf.mxu1  ;;  %v848_v52 = vadd.f32 %v821_v5, %v3775_v36  ;;  %v878_v24 = vmax.f32 %v862_v17, 0.0  ;;  %v3806_v22 = vadd.f32 %v618_v26, %v3699_v50  ;;  %v867_v23 = vadd.f32 %v3737_v25, %v847_v21 }
 0x11a   : > { %v863_v18 = vadd.f32 %v3737_v25, %v843_v16  ;;  %v841_v55 = vadd.f32 %v792_v0, %v3769_v4  ;;  %2941 = vmatprep.mubr.msk.bf16.mxu1 %vm714_vm0, %v888_v27  ;;  %v849_v19 = vadd.f32 %v824_v62, %v3780_v35  ;;  %v846_v27 = vadd.f32 %v3716_v61, %v3785_v40 }
 0x11b   : > { %2942 = vmatmul.mubr.msk.bf16.vlgmr.msra.gmra.mxu1 %vm714_vm0, %v889_v32  ;;  %v876_v33 = vmax.f32 %v860_v12, 0.0  ;;  %v892_v32 = vpack.c.bf16 %v881_v31, %v880_v60  ;;  %v868_v62 = vadd.f32 %v3737_v25, %v848_v52  ;;  %v3815_v12 = vadd.f32 %v618_v26, %v3704_v53 }
 0x11c   : > { %v861_v3 = vadd.f32 %v3737_v25, %v841_v55  ;;  %2978 = vmatpush3.bf16.msra.mxu1 %v3615_v34  ;;  %v1513_v16 = vpop.permute.xlu1 %1512  ;;  %v879_v0 = vmax.f32 %v863_v18, 0.0  ;;  %v869_v34 = vadd.f32 %v3737_v25, %v849_v19  ;;  %v866_v61 = vadd.f32 %v3737_v25, %v846_v27  ;;  %v1497_v19 = vpop.permute.xlu0 %1496 }
 0x11d   : > { %2979 = vmatprep.subr.bf16.mxu1 %v3160_v39  ;;  %v1441_v50 = vmul.f32 %v3637_v7, %v3653_v63  ;;  %v884_v52 = vmax.f32 %v868_v62, 0.0  ;;  %v850_v53 = vadd.f32 %v3757_v49, %v3806_v22  ;;  %v851_v26 = vadd.f32 %v2936_v37, %v3815_v12 }
 0x11e   : > { %v877_v29 = vmax.f32 %v861_v3, 0.0  ;;  %v891_v18 = vpack.c.bf16 %v879_v0, %v878_v24  ;;  %v885_v17 = vmax.f32 %v869_v34, 0.0  ;;  %v882_v60 = vmax.f32 %v866_v61, 0.0 }
 0x11f   : > { %v883_v3 = vmax.f32 %v867_v23, 0.0  ;;  %v1463_v27 = vadd.f32 %v3645_v51, %v1441_v50  ;;  %v1547_v63 = vmul.f32 %v3624_v38, %v3673_v15  ;;  %v871_v24 = vadd.f32 %v3737_v25, %v851_v26 }
 0x120   : > { %v890_v5 = vpack.c.bf16 %v877_v29, %v876_v33  ;;  %2980 = vmatpush3.bf16.msra.mxu1 %v3160_v39  ;;  %v3810_v55 = vpop.permute.xlu1 %1516  ;;  %v1442_v39 = vmul.f32 %v3637_v7, %v3657_v8  ;;  %v894_v0 = vpack.c.bf16 %v885_v17, %v884_v52  ;;  %v1548_v33 = vmul.f32 %v3624_v38, %v1497_v19  ;;  %v1509_v34 = vpop.permute.xlu0 %1508 }
 0x121   : > { %v893_v8 = vpack.c.bf16 %v883_v3, %v882_v60  ;;  %v870_v29 = vadd.f32 %v3737_v25, %v850_v53  ;;  %v1444_v37 = vmul.f32 %v3637_v7, %v3655_v6  ;;  %v1647_v15 = vmul.f32 %v3629_v42, %v3631_v43 }
 0x122   : > { %2945 = vmatprep.mubr.msk.bf16.mxu1 %vm714_vm0, %v890_v5  ;;  %v1464_v21 = vadd.f32 %v3645_v51, %v1442_v39  ;;  %v1446_v5 = vmul.f32 %v3637_v7, %v3659_v9  ;;  %v1563_v62 = vadd.f32 %v1547_v63, %v1463_v27  ;;  %v1648_v25 = vmul.f32 %v3629_v42, %v3690_v44 }
 0x123   : > { %2946 = vmatmul.mubr.msk.bf16.gmra.mxu1 %vm714_vm0, %v891_v18  ;;  %v1445_v6 = vmul.f32 %v3637_v7, %v3743_v30  ;;  %v886_v9 = vmax.f32 %v870_v29, 0.0  ;;  %v887_v18 = vmax.f32 %v871_v24, 0.0  ;;  %v1466_v50 = vadd.f32 %v3645_v51, %v1444_v37 }
 0x124   : > { %2949 = vmatprep.mubr.msk.bf16.mxu1 %vm714_vm0, %v892_v32  ;;  %v1443_v32 = vmul.f32 %v3637_v7, %v3661_v10  ;;  %v1564_v61 = vadd.f32 %v1548_v33, %v1464_v21  ;;  %v1468_v43 = vadd.f32 %v3645_v51, %v1446_v5  ;;  %v1663_v52 = vadd.f32 %v1647_v15, %v1563_v62  ;;  %v1521_v26 = vpop.permute.xlu0 %1520 }
 0x125   : > { %v1609_v31 = vpop.permute.xlu1 %1608  ;;  %v1549_v17 = vmul.f32 %v3624_v38, %v3678_v20  ;;  %v1550_v44 = vmul.f32 %v3624_v38, %v3683_v28  ;;  %v1467_v39 = vadd.f32 %v3645_v51, %v1445_v6  ;;  %v1552_v30 = vmul.f32 %v3624_v38, %v1513_v16 }
 0x126   : > { %v1465_v10 = vadd.f32 %v3645_v51, %v1443_v32  ;;  %v1664_v60 = vadd.f32 %v1648_v25, %v1564_v61  ;;  %v1551_v3 = vmul.f32 %v3624_v38, %v1509_v34  ;;  %v895_v53 = vpack.c.bf16 %v887_v18, %v886_v9 }
 0x127   : > { %v1650_v19 = vmul.f32 %v3629_v42, %v3634_v47  ;;  %v1652_v27 = vmul.f32 %v3629_v42, %v3639_v48  ;;  %v1447_v20 = vmul.f32 %v3637_v7, %v3765_v59  ;;  %v1448_v28 = vmul.f32 %v3637_v7, %v3782_v45 }
 0x128   : > { %v1679_v16 = vmax.f32 %v1663_v52, 0.0  ;;  %v1566_v21 = vadd.f32 %v1550_v44, %v1466_v50  ;;  %v1649_v33 = vmul.f32 %v3629_v42, %v3709_v56  ;;  %v1568_v47 = vadd.f32 %v1552_v30, %v1468_v43  ;;  %v1529_v32 = vpop.permute.xlu0 %1528 }
 0x129   : > { %v1617_v49 = vpop.permute.xlu1 %1616  ;;  %v1651_v48 = vmul.f32 %v3629_v42, %v1609_v31  ;;  %v1567_v59 = vadd.f32 %v1551_v3, %v1467_v39  ;;  %v1469_v29 = vadd.f32 %v3645_v51, %v1447_v20  ;;  %v1470_v45 = vadd.f32 %v3645_v51, %v1448_v28 }
 0x12a   : > { %v1553_v24 = vmul.f32 %v3624_v38, %v3810_v55  ;;  %v1554_v5 = vmul.f32 %v3624_v38, %v1521_v26  ;;  %v1666_v15 = vadd.f32 %v1650_v19, %v1566_v21  ;;  %v1668_v62 = vadd.f32 %v1652_v27, %v1568_v47 }
 0x12b   : > { %2950 = vmatmul.mubr.msk.bf16.gmra.mxu1 %vm714_vm0, %v893_v8  ;;  %v1680_v8 = vmax.f32 %v1664_v60, 0.0  ;;  %v1667_v34 = vadd.f32 %v1651_v48, %v1567_v59  ;;  %v1653_v31 = vmul.f32 %v3629_v42, %v1617_v49  ;;  %v1449_v9 = vmul.f32 %v3637_v7, %v3663_v11 }
 0x12c   : > { %2953 = vmatprep.mubr.msk.bf16.mxu1 %vm714_vm0, %v894_v0  ;;  %v1565_v0 = vadd.f32 %v1549_v17, %v1465_v10  ;;  %v1569_v25 = vadd.f32 %v1553_v24, %v1469_v29  ;;  %v1570_v61 = vadd.f32 %v1554_v5, %v1470_v45  ;;  %v1682_v18 = vmax.f32 %v1666_v15, 0.0  ;;  %v1625_v52 = vpop.permute.xlu0 %1624 }
 0x12d   : > { %v1621_v23 = vpop.permute.xlu1 %1620  ;;  %v1684_v43 = vmax.f32 %v1668_v62, 0.0  ;;  %v1683_v10 = vmax.f32 %v1667_v34, 0.0  ;;  %v1452_v11 = vmul.f32 %v3637_v7, %v3671_v14  ;;  %v1556_v19 = vmul.f32 %v3624_v38, %v1529_v32 }
 0x12e   : > { %v1665_v56 = vadd.f32 %v1649_v33, %v1565_v0  ;;  %v1654_v6 = vmul.f32 %v3629_v42, %v1621_v23  ;;  %v1669_v17 = vadd.f32 %v1653_v31, %v1569_v25  ;;  %v1471_v23 = vadd.f32 %v3645_v51, %v1449_v9  ;;  %v3162_v31 = vld [vmem:[#allocation4 + $0x20] sm:$0xff]  }
 0x12f   : > { %v1474_v27 = vadd.f32 %v3645_v51, %v1452_v11  ;;  %v1655_v14 = vmul.f32 %v3629_v42, %v1625_v52  ;;  %2959 = vmatprep.subr.bf16.mxu0 %v3162_v31 }
 0x130   : > { %v1681_v55 = vmax.f32 %v1665_v56, 0.0  ;;  %v1670_v44 = vadd.f32 %v1654_v6, %v1570_v61  ;;  %v1685_v3 = vmax.f32 %v1669_v17, 0.0  ;;  %2960 = vmatpush3.bf16.msra.mxu0 %v3162_v31  ;;  %v3163_v6 = vld [vmem:[#allocation4 + $0x48] sm:$0xff]  }
 0x131   : > { %2997 = vmatprep.subr.bf16.mxu0 %v3163_v6 }
 0x132   : > { %v1421_v63 = vpop.permute.xlu1 %1420  ;;  %v1694_v39 = vpack.c.bf16 %v1682_v18, %v1681_v55  ;;  %v1686_v26 = vmax.f32 %v1670_v44, 0.0 }
 0x133   : > { %2954 = vmatmul.mubr.msk.bf16.gmra.mxu1 %vm714_vm0, %v895_v53  ;;  %v1450_v49 = vmul.f32 %v3637_v7, %v1421_v63 }
 0x134   : > { %2981 = vmatprep.mubr.msk.bf16.mxu1 %vm714_vm0, %v3692_v46  ;;  %v1693_v46 = vpack.c.bf16 %v1680_v8, %v1679_v16  ;;  %v1637_v16 = vpop.permute.xlu0 %1636  ;;  %v1696_v21 = vpack.c.bf16 %v1686_v26, %v1685_v3 }
 0x135   : > { %v1472_v53 = vadd.f32 %v3645_v51, %v1450_v49  ;;  %v1658_v47 = vmul.f32 %v3629_v42, %v1637_v16 }
 0x136   : > { %v1426_v37 = vpop.permute.xlu1 %1425 }
 0x137   : > { %v1451_v20 = vmul.f32 %v3637_v7, %v1426_v37  ;;  %v1572_v33 = vadd.f32 %v1556_v19, %v1472_v53 }
 0x139   : > { %v1473_v48 = vadd.f32 %v3645_v51, %v1451_v20 }
 0x13b   : > { %2982 = vmatmul.mubr.msk.bf16.vlgmr.msra.gmra.mxu1 %vm714_vm0, %v3711_v57  ;;  %v1525_v50 = vpop.permute.xlu1 %1524  ;;  %v1695_v57 = vpack.c.bf16 %v1684_v43, %v1683_v10 }
 0x13c   : > { %2985 = vmatprep.mubr.msk.bf16.mxu1 %vm714_vm0, %v1693_v46  ;;  %v1555_v30 = vmul.f32 %v3624_v38, %v1525_v50 }
 0x13e   : > { %v1571_v28 = vadd.f32 %v1555_v30, %v1471_v23 }
 0x13f   : > { %v1533_v60 = vpop.permute.xlu1 %1532 }
 0x140   : > { %v1557_v8 = vmul.f32 %v3624_v38, %v1533_v60  ;;  %v1671_v29 = vadd.f32 %v1655_v14, %v1571_v28 }
 0x142   : > { %v1573_v24 = vadd.f32 %v1557_v8, %v1473_v48  ;;  %v1687_v37 = vmax.f32 %v1671_v29, 0.0 }
 0x143   : > { %2986 = vmatmul.mubr.msk.bf16.gmra.mxu1 %vm714_vm0, %v1694_v39  ;;  %v1537_v63 = vpop.permute.xlu1 %1536 }
 0x144   : > { %v1558_v0 = vmul.f32 %v3624_v38, %v1537_v63  ;;  %2989 = vmatprep.mubr.msk.bf16.mxu1 %vm714_vm0, %v1695_v57 }
 0x146   : > { %v1574_v59 = vadd.f32 %v1558_v0, %v1474_v27 }
 0x148   : > { %v1629_v7 = vpop.permute.xlu1 %1628  ;;  %v1674_v15 = vadd.f32 %v1658_v47, %v1574_v59 }
 0x149   : > { %v1656_v45 = vmul.f32 %v3629_v42, %v1629_v7 }
 0x14a   : > { %v1690_v34 = vmax.f32 %v1674_v15, 0.0 }
 0x14b   : > { %v1672_v5 = vadd.f32 %v1656_v45, %v1572_v33  ;;  %2990 = vmatmul.mubr.msk.bf16.gmra.mxu1 %vm714_vm0, %v1696_v21 }
 0x14c   : > { %v1633_v56 = vpop.permute.xlu1 %1632 }
 0x14d   : > { %v1688_v32 = vmax.f32 %v1672_v5, 0.0  ;;  %v1657_v62 = vmul.f32 %v3629_v42, %v1633_v56  ;;  %v2775_v42 = vld [vmem:[%s4295_s6 + $0x1] ss:$0 sm:$0xff] }
 0x14f   : > { %v1697_v46 = vpack.c.bf16 %v1688_v32, %v1687_v37  ;;  %v1673_v51 = vadd.f32 %v1657_v62, %v1573_v24 }
 0x151   : > { %v1689_v25 = vmax.f32 %v1673_v51, 0.0  ;;  %2993 = vmatprep.mubr.msk.bf16.mxu1 %vm714_vm0, %v1697_v46 }
 0x153   : > { %v1698_v38 = vpack.c.bf16 %v1690_v34, %v1689_v25 }
 0x155   : > { %2994 = vmatmul.mubr.msk.bf16.gmra.mxu1 %vm714_vm0, %v1698_v38 }
 0x1db   : > { %v2943_v61 = vpop.f32.mrf.mxu1 }
 0x1dc   : > { %v979_v43 = vadd.f32 %v2943_v61, %v2775_v42 }
 0x1dd   : > { %v970_v9 = vpop.f32.mrf.mxu1 }
 0x1de   : > { %v971_v55 = vadd.f32 %v2775_v42, %v970_v9  ;;  %v1035_v11 = vmax.f32 %v979_v43, 0.0  ;;  %v3164_v43 = vld [vmem:[#allocation4 + $0x40] sm:$0xff]  }
 0x1df   : > { %v2944_v18 = vpop.f32.mrf.mxu1 }
 0x1e0   : > { %v982_v50 = vadd.f32 %v2944_v18, %v2775_v42  ;;  %v1033_v44 = vmax.f32 %v971_v55, 0.0 }
 0x1e1   : > { %v973_v10 = vpop.f32.mrf.mxu1 }
 0x1e2   : > { %v974_v52 = vadd.f32 %v2775_v42, %v973_v10  ;;  %v1036_v17 = vmax.f32 %v982_v50, 0.0  ;;  %v3165_v10 = vld [vmem:[#allocation4 + $0x58] sm:$0xff]  }
 0x1e3   : > { %v2947_v49 = vpop.f32.mrf.mxu1  ;;  %3017 = vmatprep.subr.bf16.mxu1 %v3165_v10 }
 0x1e4   : > { %v1034_v23 = vmax.f32 %v974_v52, 0.0  ;;  %v1050_v60 = vpack.c.bf16 %v1036_v17, %v1035_v11  ;;  %v995_v26 = vadd.f32 %v2947_v49, %v2775_v42  ;;  %v3166_v52 = vld [vmem:[#allocation4 + $0x50] sm:$0xff]   ;;  %3018 = vmatpush3.bf16.msra.mxu1 %v3165_v10 }
 0x1e5   : > { %v986_v39 = vpop.f32.mrf.mxu1  ;;  %3019 = vmatprep.subr.bf16.mxu1 %v3166_v52 }
 0x1e6   : > { %v1049_v30 = vpack.c.bf16 %v1034_v23, %v1033_v44  ;;  %v987_v3 = vadd.f32 %v2775_v42, %v986_v39  ;;  %v1039_v16 = vmax.f32 %v995_v26, 0.0 }
 0x1e7   : > { %v2948_v57 = vpop.f32.mrf.mxu1 }
 0x1e8   : > { %v998_v53 = vadd.f32 %v2948_v57, %v2775_v42  ;;  %2961 = vmatprep.mubr.msk.bf16.mxu0 %vm714_vm0, %v1049_v30  ;;  %v1037_v63 = vmax.f32 %v987_v3, 0.0  ;;  %3020 = vmatpush3.bf16.msra.mxu1 %v3166_v52 }
 0x1e9   : > { %v989_v19 = vpop.f32.mrf.mxu1  ;;  %2962 = vmatmul.mubr.msk.bf16.vlgmr.msra.gmra.mxu0 %vm714_vm0, %v1050_v60  ;;  %v3919_v60 = vld [vmem:[%s4295_s6 + $0x2] ss:$0 sm:$0xff] }
 0x1ea   : > { %v990_v27 = vadd.f32 %v2775_v42, %v989_v19  ;;  %2998 = vmatpush3.bf16.msra.mxu0 %v3163_v6  ;;  %v1040_v20 = vmax.f32 %v998_v53, 0.0 }
 0x1eb   : > { %v2951_v28 = vpop.f32.mrf.mxu1  ;;  %2999 = vmatprep.subr.bf16.mxu0 %v3164_v43 }
 0x1ec   : > { %v1038_v14 = vmax.f32 %v990_v27, 0.0  ;;  %v1052_v33 = vpack.c.bf16 %v1040_v20, %v1039_v16  ;;  %v1011_v59 = vadd.f32 %v2951_v28, %v2775_v42 }
 0x1ed   : > { %v1002_v0 = vpop.f32.mrf.mxu1 }
 0x1ee   : > { %v1051_v21 = vpack.c.bf16 %v1038_v14, %v1037_v63  ;;  %v1003_v48 = vadd.f32 %v2775_v42, %v1002_v0  ;;  %v1043_v15 = vmax.f32 %v1011_v59, 0.0  ;;  %3000 = vmatpush3.bf16.msra.mxu0 %v3164_v43 }
 0x1ef   : > { %v2952_v47 = vpop.f32.mrf.mxu1 }
 0x1f0   : > { %v1014_v8 = vadd.f32 %v2952_v47, %v2775_v42  ;;  %2965 = vmatprep.mubr.msk.bf16.mxu0 %vm714_vm0, %v1051_v21  ;;  %v1041_v37 = vmax.f32 %v1003_v48, 0.0 }
 0x1f1   : > { %v1005_v29 = vpop.f32.mrf.mxu1  ;;  %2966 = vmatmul.mubr.msk.bf16.gmra.mxu0 %vm714_vm0, %v1052_v33 }
 0x1f2   : > { %v1006_v7 = vadd.f32 %v2775_v42, %v1005_v29  ;;  %v1044_v45 = vmax.f32 %v1014_v8, 0.0 }
 0x1f3   : > { %v2955_v24 = vpop.f32.mrf.mxu1 }
 0x1f4   : > { %v1042_v5 = vmax.f32 %v1006_v7, 0.0  ;;  %v1054_v62 = vpack.c.bf16 %v1044_v45, %v1043_v15  ;;  %v1027_v25 = vadd.f32 %v2955_v24, %v2775_v42  ;;  %v4320_v45 = vld [vmem:[#allocation10_spill] sm:$0xff] }
 0x1f5   : > { %v1018_v56 = vpop.f32.mrf.mxu1 }
 0x1f6   : > { %v1053_v32 = vpack.c.bf16 %v1042_v5, %v1041_v37  ;;  %v1019_v34 = vadd.f32 %v2775_v42, %v1018_v56  ;;  %v1047_v18 = vmax.f32 %v1027_v25, 0.0 }
 0x1f7   : > { %v2956_v46 = vpop.f32.mrf.mxu1 }
 0x1f8   : > { %v1030_v51 = vadd.f32 %v2956_v46, %v2775_v42  ;;  %2969 = vmatprep.mubr.msk.bf16.mxu0 %vm714_vm0, %v1053_v32  ;;  %v1045_v61 = vmax.f32 %v1019_v34, 0.0  ;;  %v4321_v32 = vld [vmem:[#allocation11_spill] sm:$0xff] }
 0x1f9   : > { %v1021_v38 = vpop.f32.mrf.mxu1  ;;  %2970 = vmatmul.mubr.msk.bf16.gmra.mxu0 %vm714_vm0, %v1054_v62 }
 0x1fa   : > { %v1022_v31 = vadd.f32 %v2775_v42, %v1021_v38  ;;  %v1048_v6 = vmax.f32 %v1030_v51, 0.0 }
 0x1fb   : > { %v2983_v42 = vpop.f32.mrf.mxu1 }
 0x1fc   : > { %v1046_v9 = vmax.f32 %v1022_v31, 0.0  ;;  %v1056_v50 = vpack.c.bf16 %v1048_v6, %v1047_v18 }
 0x1fd   : > { %v1769_v17 = vpop.f32.mrf.mxu1 }
 0x1fe   : > { %v1055_v55 = vpack.c.bf16 %v1046_v9, %v1045_v61 }
 0x1ff   : > { %v2984_v49 = vpop.f32.mrf.mxu1 }
 0x200   : > { %2973 = vmatprep.mubr.msk.bf16.mxu0 %vm714_vm0, %v1055_v55 }
 0x201   : > { %2974 = vmatmul.mubr.msk.bf16.gmra.mxu0 %vm714_vm0, %v1056_v50  ;;  %v1772_v44 = vpop.f32.mrf.mxu1 }
 0x203   : > { %v2987_v23 = vpop.f32.mrf.mxu1 }
 0x205   : > { %v1785_v11 = vpop.f32.mrf.mxu1 }
 0x207   : > { %v2988_v39 = vpop.f32.mrf.mxu1 }
 0x209   : > { %v1788_v26 = vpop.f32.mrf.mxu1 }
 0x20b   : > { %v2991_v63 = vpop.f32.mrf.mxu1 }
 0x20d   : > { %v1801_v8 = vpop.f32.mrf.mxu1 }
 0x20f   : > { %v2992_v46 = vpop.f32.mrf.mxu1 }
 0x211   : > { %v1804_v52 = vpop.f32.mrf.mxu1 }
 0x2a9   : > { %v2963_v30 = vpop.f32.mrf.mxu0 }
 0x2aa   : > { %v1192_v57 = vadd.f32 %v2963_v30, %v3714_v58  ;;  %v4322_v30 = vld [vmem:[#allocation8_spill] sm:$0xff] }
 0x2ab   : > { %v1127_v3 = vpop.f32.mrf.mxu0 }
 0x2ac   : > { %v1190_v53 = vadd.f32 %v1127_v3, %v3707_v54  ;;  %v1212_v19 = vadd.f32 %v3919_v60, %v1192_v57  ;;  %v3931_v54 = vld [vmem:[%s4295_s6 + $0x3] ss:$0 sm:$0xff] }
 0x2ad   : > { %v2964_v27 = vpop.f32.mrf.mxu0 }
 0x2ae   : > { %v1210_v20 = vadd.f32 %v3919_v60, %v1190_v53  ;;  %v1193_v28 = vadd.f32 %v2964_v27, %v3720_v2  ;;  %v1834_v33 = vadd.f32 %v2983_v42, %v1212_v19  ;;  %v2995_v19 = vpop.f32.mrf.mxu1 }
 0x2af   : > { %v1130_v14 = vpop.f32.mrf.mxu0 }
 0x2b0   : > { %v1832_v16 = vadd.f32 %v1769_v17, %v1210_v20  ;;  %v1213_v0 = vadd.f32 %v3919_v60, %v1193_v28  ;;  %v1191_v21 = vadd.f32 %v1130_v14, %v3724_v13  ;;  %v3943_v37 = vadd.f32 %v3931_v54, %v1834_v33 }
 0x2b1   : > { %v2967_v58 = vpop.f32.mrf.mxu0 }
 0x2b2   : > { %v1835_v47 = vadd.f32 %v2984_v49, %v1213_v0  ;;  %v1211_v48 = vadd.f32 %v3919_v60, %v1191_v21  ;;  %v1196_v2 = vadd.f32 %v2967_v58, %v3754_v41  ;;  %v3936_v29 = vadd.f32 %v3931_v54, %v1832_v16  ;;  %v4323_v16 = vld [vmem:[#allocation9_spill] sm:$0xff] }
 0x2b3   : > { %v1143_v59 = vpop.f32.mrf.mxu0  ;;  %v1870_v6 = vmax.f32 %v3943_v37, 0.0 }
 0x2b4   : > { %v3939_v7 = vadd.f32 %v3931_v54, %v1835_v47  ;;  %v1833_v13 = vadd.f32 %v1772_v44, %v1211_v48  ;;  %v1194_v24 = vadd.f32 %v1143_v59, %v4320_v45  ;;  %v1216_v56 = vadd.f32 %v3919_v60, %v1196_v2  ;;  %v1817_v59 = vpop.f32.mrf.mxu1 }
 0x2b5   : > { %v2968_v5 = vpop.f32.mrf.mxu0  ;;  %v1868_v25 = vmax.f32 %v3936_v29, 0.0 }
 0x2b6   : > { %v3946_v15 = vadd.f32 %v3931_v54, %v1833_v13  ;;  %v1214_v41 = vadd.f32 %v3919_v60, %v1194_v24  ;;  %v1197_v62 = vadd.f32 %v2968_v5, %v4321_v32  ;;  %v1871_v34 = vmax.f32 %v3939_v7, 0.0 }
 0x2b7   : > { %v1146_v51 = vpop.f32.mrf.mxu0  ;;  %v1838_v55 = vadd.f32 %v2987_v23, %v1216_v56 }
 0x2b8   : > { %v1869_v38 = vmax.f32 %v3946_v15, 0.0  ;;  %v1217_v31 = vadd.f32 %v3919_v60, %v1197_v62  ;;  %v1836_v61 = vadd.f32 %v1785_v11, %v1214_v41  ;;  %v1195_v9 = vadd.f32 %v1146_v51, %v3769_v4 }
 0x2b9   : > { %v2971_v18 = vpop.f32.mrf.mxu0  ;;  %v1885_v42 = vpack.c.bf16 %v1871_v34, %v1870_v6 }
 0x2ba   : > { %v1839_v50 = vadd.f32 %v2988_v39, %v1217_v31  ;;  %v1200_v43 = vadd.f32 %v2971_v18, %v3785_v40  ;;  %v1884_v10 = vpack.c.bf16 %v1869_v38, %v1868_v25  ;;  %v1215_v17 = vadd.f32 %v3919_v60, %v1195_v9  ;;  %v2996_v25 = vpop.f32.mrf.mxu1 }
 0x2bb   : > { %v1159_v49 = vpop.f32.mrf.mxu0  ;;  %v3965_v4 = vadd.f32 %v3931_v54, %v1836_v61  ;;  %v3970_v39 = vadd.f32 %v3931_v54, %v1838_v55 }
 0x2bc   : > { %v3960_v44 = vadd.f32 %v3931_v54, %v1839_v50  ;;  %v1198_v57 = vadd.f32 %v1159_v49, %v4322_v30  ;;  %3001 = vmatprep.mubr.msk.bf16.mxu0 %vm714_vm0, %v1884_v10  ;;  %v1837_v23 = vadd.f32 %v1788_v26, %v1215_v17  ;;  %v1220_v11 = vadd.f32 %v3919_v60, %v1200_v43 }
 0x2bd   : > { %v2972_v40 = vpop.f32.mrf.mxu0  ;;  %3002 = vmatmul.mubr.msk.bf16.vlgmr.msra.gmra.mxu0 %vm714_vm0, %v1885_v42  ;;  %v1872_v21 = vmax.f32 %v3965_v4, 0.0 }
 0x2be   : > { %v1218_v3 = vadd.f32 %v3919_v60, %v1198_v57  ;;  %v1201_v53 = vadd.f32 %v2972_v40, %v3788_v1  ;;  %v3975_v27 = vadd.f32 %v3931_v54, %v1837_v23  ;;  %v1875_v28 = vmax.f32 %v3960_v44, 0.0 }
 0x2bf   : > { %v1162_v20 = vpop.f32.mrf.mxu0  ;;  %v1842_v58 = vadd.f32 %v2991_v63, %v1220_v11  ;;  %v1874_v1 = vmax.f32 %v3970_v39, 0.0 }
 0x2c0   : > { %v1840_v26 = vadd.f32 %v1801_v8, %v1218_v3  ;;  %v1221_v14 = vadd.f32 %v3919_v60, %v1201_v53  ;;  %v1199_v0 = vadd.f32 %v1162_v20, %v4323_v16  ;;  %v1873_v33 = vmax.f32 %v3975_v27, 0.0 }
 0x2c1   : > { %v2975_v47 = vpop.f32.mrf.mxu0  ;;  %v1887_v41 = vpack.c.bf16 %v1875_v28, %v1874_v1  ;;  %v3993_v32 = vadd.f32 %v3931_v54, %v1842_v58 }
 0x2c2   : > { %v1843_v48 = vadd.f32 %v2992_v46, %v1221_v14  ;;  %v1219_v2 = vadd.f32 %v3919_v60, %v1199_v0  ;;  %v3985_v13 = vadd.f32 %v3931_v54, %v1840_v26  ;;  %v1204_v8 = vadd.f32 %v2975_v47, %v3806_v22  ;;  %v2809_v26 = vld [vmem:[%s4295_s6 + $0x4] ss:$0 sm:$0xff] }
 0x2c3   : > { %v1175_v45 = vpop.f32.mrf.mxu0  ;;  %v1886_v24 = vpack.c.bf16 %v1873_v33, %v1872_v21  ;;  %v1878_v55 = vmax.f32 %v3993_v32, 0.0 }
 0x2c4   : > { %v3989_v5 = vadd.f32 %v3931_v54, %v1843_v48  ;;  %v1841_v56 = vadd.f32 %v1804_v52, %v1219_v2  ;;  %v1202_v63 = vadd.f32 %v1175_v45, %v3775_v36  ;;  %v1224_v22 = vadd.f32 %v3919_v60, %v1204_v8  ;;  %v1820_v52 = vpop.f32.mrf.mxu1 }
 0x2c5   : > { %3005 = vmatprep.mubr.msk.bf16.mxu0 %vm714_vm0, %v1886_v24  ;;  %v2976_v62 = vpop.f32.mrf.mxu0  ;;  %v1876_v36 = vmax.f32 %v3985_v13, 0.0 }
 0x2c6   : > { %v3997_v46 = vadd.f32 %v3931_v54, %v1841_v56  ;;  %v1222_v34 = vadd.f32 %v3919_v60, %v1202_v63  ;;  %v1205_v51 = vadd.f32 %v2976_v62, %v3815_v12  ;;  %3006 = vmatmul.mubr.msk.bf16.gmra.mxu0 %vm714_vm0, %v1887_v41  ;;  %v1879_v38 = vmax.f32 %v3989_v5, 0.0 }
 0x2c7   : > { %v1178_v31 = vpop.f32.mrf.mxu0  ;;  %v1846_v50 = vadd.f32 %v2995_v19, %v1224_v22  ;;  %v3168_v19 = vld [vmem:[%s4324_s13] sm:$0xff]  }
 0x2c8   : > { %v1877_v6 = vmax.f32 %v3997_v46, 0.0  ;;  %v1844_v61 = vadd.f32 %v1817_v59, %v1222_v34  ;;  %v1225_v9 = vadd.f32 %v3919_v60, %v1205_v51  ;;  %v1203_v18 = vadd.f32 %v1178_v31, %v3780_v35 }
 0x2c9   : > { %v1889_v30 = vpack.c.bf16 %v1879_v38, %v1878_v55  ;;  %v4018_v35 = vadd.f32 %v3931_v54, %v1846_v50 }
 0x2ca   : > { %v1847_v43 = vadd.f32 %v2996_v25, %v1225_v9  ;;  %v1223_v12 = vadd.f32 %v3919_v60, %v1203_v18  ;;  %v1888_v10 = vpack.c.bf16 %v1877_v6, %v1876_v36  ;;  %v4011_v42 = vadd.f32 %v3931_v54, %v1844_v61 }
 0x2cb   : > { %v1882_v40 = vmax.f32 %v4018_v35, 0.0 }
 0x2cc   : > { %v4014_v17 = vadd.f32 %v3931_v54, %v1847_v43  ;;  %v1845_v49 = vadd.f32 %v1820_v52, %v1223_v12  ;;  %3009 = vmatprep.mubr.msk.bf16.mxu0 %vm714_vm0, %v1888_v10  ;;  %v1880_v60 = vmax.f32 %v4011_v42, 0.0 }
 0x2ce   : > { %v4021_v57 = vadd.f32 %v3931_v54, %v1845_v49  ;;  %3010 = vmatmul.mubr.msk.bf16.gmra.mxu0 %vm714_vm0, %v1889_v30  ;;  %v1883_v23 = vmax.f32 %v4014_v17, 0.0  ;;  %v3167_v54 = vld [vmem:[%s4324_s13 + $0x8] sm:$0xff]  }
 0x2cf   : > { %3037 = vmatprep.subr.bf16.mxu0 %v3167_v54 }
 0x2d0   : > { %v1881_v11 = vmax.f32 %v4021_v57, 0.0  ;;  %v1891_v53 = vpack.c.bf16 %v1883_v23, %v1882_v40  ;;  %3038 = vmatpush3.bf16.msra.mxu0 %v3167_v54 }
 0x2d1   : > { %3039 = vmatprep.subr.bf16.mxu0 %v3168_v19 }
 0x2d2   : > { %v1890_v3 = vpack.c.bf16 %v1881_v11, %v1880_v60 }
 0x2d4   : > { %3013 = vmatprep.mubr.msk.bf16.mxu0 %vm714_vm0, %v1890_v3  ;;  %3040 = vmatpush3.bf16.msra.mxu0 %v3168_v19 }
 0x2d6   : > { %3014 = vmatmul.mubr.msk.bf16.gmra.mxu0 %vm714_vm0, %v1891_v53 }
 0x37d   : > { %v3003_v20 = vpop.f32.mrf.mxu0 }
 0x37e   : > { %v1975_v21 = vadd.f32 %v3003_v20, %v2809_v26 }
 0x37f   : > { %v1966_v28 = vpop.f32.mrf.mxu0 }
 0x380   : > { %v1967_v16 = vadd.f32 %v2809_v26, %v1966_v28  ;;  %v2031_v59 = vmax.f32 %v1975_v21, 0.0 }
 0x381   : > { %v3004_v14 = vpop.f32.mrf.mxu0 }
 0x382   : > { %v1978_v0 = vadd.f32 %v3004_v14, %v2809_v26  ;;  %v2029_v1 = vmax.f32 %v1967_v16, 0.0 }
 0x383   : > { %v1969_v33 = vpop.f32.mrf.mxu0 }
 0x384   : > { %v1970_v58 = vadd.f32 %v2809_v26, %v1969_v33  ;;  %v2032_v47 = vmax.f32 %v1978_v0, 0.0 }
 0x386   : > { %v2030_v48 = vmax.f32 %v1970_v58, 0.0  ;;  %v3007_v2 = vpop.f32.mrf.mxu0  ;;  %v2046_v24 = vpack.c.bf16 %v2032_v47, %v2031_v59 }
 0x387   : > { %v1991_v62 = vadd.f32 %v3007_v2, %v2809_v26 }
 0x388   : > { %v2045_v8 = vpack.c.bf16 %v2030_v48, %v2029_v1  ;;  %v1982_v45 = vpop.f32.mrf.mxu0 }
 0x389   : > { %v1983_v63 = vadd.f32 %v2809_v26, %v1982_v45  ;;  %v2035_v31 = vmax.f32 %v1991_v62, 0.0 }
 0x38a   : > { %v3008_v56 = vpop.f32.mrf.mxu0  ;;  %3021 = vmatprep.mubr.msk.bf16.mxu1 %vm714_vm0, %v2045_v8 }
 0x38b   : > { %v1994_v41 = vadd.f32 %v3008_v56, %v2809_v26  ;;  %3022 = vmatmul.mubr.msk.bf16.vlgmr.msra.gmra.mxu1 %vm714_vm0, %v2046_v24  ;;  %v2033_v36 = vmax.f32 %v1983_v63, 0.0  ;;  %v2830_v24 = vld [vmem:[%s4295_s6 + $0x5] ss:$0 sm:$0xff] }
 0x38c   : > { %v1985_v22 = vpop.f32.mrf.mxu0 }
 0x38d   : > { %v1986_v34 = vadd.f32 %v2809_v26, %v1985_v22  ;;  %v2036_v51 = vmax.f32 %v1994_v41, 0.0 }
 0x38e   : > { %v3011_v25 = vpop.f32.mrf.mxu0 }
 0x38f   : > { %v2034_v38 = vmax.f32 %v1986_v34, 0.0  ;;  %v2048_v9 = vpack.c.bf16 %v2036_v51, %v2035_v31  ;;  %v2007_v43 = vadd.f32 %v3011_v25, %v2809_v26 }
 0x390   : > { %v1998_v6 = vpop.f32.mrf.mxu0 }
 0x391   : > { %v2047_v61 = vpack.c.bf16 %v2034_v38, %v2033_v36  ;;  %v1999_v55 = vadd.f32 %v2809_v26, %v1998_v6  ;;  %v2039_v23 = vmax.f32 %v2007_v43, 0.0 }
 0x392   : > { %v3012_v18 = vpop.f32.mrf.mxu0 }
 0x393   : > { %v2010_v50 = vadd.f32 %v3012_v18, %v2809_v26  ;;  %3025 = vmatprep.mubr.msk.bf16.mxu1 %vm714_vm0, %v2047_v61  ;;  %v2037_v30 = vmax.f32 %v1999_v55, 0.0 }
 0x394   : > { %v2001_v12 = vpop.f32.mrf.mxu0  ;;  %3026 = vmatmul.mubr.msk.bf16.gmra.mxu1 %vm714_vm0, %v2048_v9 }
 0x395   : > { %v2002_v10 = vadd.f32 %v2809_v26, %v2001_v12  ;;  %v2040_v52 = vmax.f32 %v2010_v50, 0.0 }
 0x396   : > { %v3015_v49 = vpop.f32.mrf.mxu0 }
 0x397   : > { %v2038_v60 = vmax.f32 %v2002_v10, 0.0  ;;  %v2050_v3 = vpack.c.bf16 %v2040_v52, %v2039_v23  ;;  %v2023_v20 = vadd.f32 %v3015_v49, %v2809_v26 }
 0x398   : > { %v2014_v11 = vpop.f32.mrf.mxu0 }
 0x399   : > { %v2049_v40 = vpack.c.bf16 %v2038_v60, %v2037_v30  ;;  %v2015_v54 = vadd.f32 %v2809_v26, %v2014_v11  ;;  %v2043_v33 = vmax.f32 %v2023_v20, 0.0 }
 0x39a   : > { %v3016_v53 = vpop.f32.mrf.mxu0 }
 0x39b   : > { %v2026_v19 = vadd.f32 %v3016_v53, %v2809_v26  ;;  %3029 = vmatprep.mubr.msk.bf16.mxu1 %vm714_vm0, %v2049_v40  ;;  %v2041_v0 = vmax.f32 %v2015_v54, 0.0 }
 0x39c   : > { %v2017_v28 = vpop.f32.mrf.mxu0  ;;  %3030 = vmatmul.mubr.msk.bf16.gmra.mxu1 %vm714_vm0, %v2050_v3 }
 0x39d   : > { %v2018_v14 = vadd.f32 %v2809_v26, %v2017_v28  ;;  %v2044_v16 = vmax.f32 %v2026_v19, 0.0 }
 0x39f   : > { %v2042_v21 = vmax.f32 %v2018_v14, 0.0  ;;  %v2052_v47 = vpack.c.bf16 %v2044_v16, %v2043_v33 }
 0x3a1   : > { %v2051_v58 = vpack.c.bf16 %v2042_v21, %v2041_v0 }
 0x3a3   : > { %3033 = vmatprep.mubr.msk.bf16.mxu1 %vm714_vm0, %v2051_v58 }
 0x3a4   : > { %3034 = vmatmul.mubr.msk.bf16.gmra.mxu1 %vm714_vm0, %v2052_v47 }
 0x44b   : > { %v3023_v1 = vpop.f32.mrf.mxu1 }
 0x44c   : > { %v2188_v45 = vadd.f32 %v3023_v1, %v3943_v37 }
 0x44d   : > { %v2123_v48 = vpop.f32.mrf.mxu1 }
 0x44e   : > { %v2186_v59 = vadd.f32 %v2123_v48, %v3936_v29  ;;  %v2208_v34 = vadd.f32 %v2830_v24, %v2188_v45 }
 0x44f   : > { %v3024_v2 = vpop.f32.mrf.mxu1 }
 0x450   : > { %v2189_v8 = vadd.f32 %v3024_v2, %v3939_v7  ;;  %v2206_v41 = vadd.f32 %v2830_v24, %v2186_v59 }
 0x451   : > { %v2126_v26 = vpop.f32.mrf.mxu1 }
 0x452   : > { %v2187_v56 = vadd.f32 %v2126_v26, %v3946_v15  ;;  %v2209_v63 = vadd.f32 %v2830_v24, %v2189_v8 }
 0x454   : > { %v2207_v62 = vadd.f32 %v2830_v24, %v2187_v56  ;;  %v3027_v22 = vpop.f32.mrf.mxu1  ;;  %v2223_v36 = vpack.c.bf16 %v2209_v63, %v2208_v34 }
 0x455   : > { %v2192_v38 = vadd.f32 %v3027_v22, %v3970_v39 }
 0x456   : > { %v2222_v51 = vpack.c.bf16 %v2207_v62, %v2206_v41  ;;  %v2139_v25 = vpop.f32.mrf.mxu1 }
 0x457   : > { %v2190_v7 = vadd.f32 %v2139_v25, %v3965_v4  ;;  %v2212_v55 = vadd.f32 %v2830_v24, %v2192_v38 }
 0x458   : > { %v3028_v29 = vpop.f32.mrf.mxu1  ;;  %3041 = vmatprep.mubr.msk.bf16.mxu0 %vm714_vm0, %v2222_v51 }
 0x459   : > { %v2193_v37 = vadd.f32 %v3028_v29, %v3960_v44  ;;  %3042 = vmatmul.mubr.msk.bf16.vlgmr.msra.gmra.mxu0 %vm714_vm0, %v2223_v36  ;;  %v2210_v9 = vadd.f32 %v2830_v24, %v2190_v7 }
 0x45a   : > { %v2142_v15 = vpop.f32.mrf.mxu1 }
 0x45b   : > { %v2191_v31 = vadd.f32 %v2142_v15, %v3975_v27  ;;  %v2213_v6 = vadd.f32 %v2830_v24, %v2193_v37 }
 0x45c   : > { %v3031_v61 = vpop.f32.mrf.mxu1 }
 0x45d   : > { %v2211_v18 = vadd.f32 %v2830_v24, %v2191_v31  ;;  %v2225_v12 = vpack.c.bf16 %v2213_v6, %v2212_v55  ;;  %v2196_v39 = vadd.f32 %v3031_v61, %v3993_v32 }
 0x45e   : > { %v2155_v50 = vpop.f32.mrf.mxu1 }
 0x45f   : > { %v2224_v43 = vpack.c.bf16 %v2211_v18, %v2210_v9  ;;  %v2194_v4 = vadd.f32 %v2155_v50, %v3985_v13  ;;  %v2216_v11 = vadd.f32 %v2830_v24, %v2196_v39 }
 0x460   : > { %v3032_v10 = vpop.f32.mrf.mxu1 }
 0x461   : > { %v2197_v44 = vadd.f32 %v3032_v10, %v3989_v5  ;;  %3045 = vmatprep.mubr.msk.bf16.mxu0 %vm714_vm0, %v2224_v43  ;;  %v2214_v60 = vadd.f32 %v2830_v24, %v2194_v4 }
 0x462   : > { %v2158_v52 = vpop.f32.mrf.mxu1  ;;  %3046 = vmatmul.mubr.msk.bf16.gmra.mxu0 %vm714_vm0, %v2225_v12 }
 0x463   : > { %v2195_v27 = vadd.f32 %v2158_v52, %v3997_v46  ;;  %v2217_v49 = vadd.f32 %v2830_v24, %v2197_v44 }
 0x464   : > { %v3035_v30 = vpop.f32.mrf.mxu1 }
 0x465   : > { %v2215_v23 = vadd.f32 %v2830_v24, %v2195_v27  ;;  %v2227_v53 = vpack.c.bf16 %v2217_v49, %v2216_v11  ;;  %v2200_v32 = vadd.f32 %v3035_v30, %v4018_v35 }
 0x466   : > { %v2171_v40 = vpop.f32.mrf.mxu1 }
 0x467   : > { %v2226_v3 = vpack.c.bf16 %v2215_v23, %v2214_v60  ;;  %v2198_v5 = vadd.f32 %v2171_v40, %v4011_v42  ;;  %v2220_v16 = vadd.f32 %v2830_v24, %v2200_v32  ;;  %v2831_v42 = vld [vmem:[%s4325_s16] ss:$0 sm:$0xff] }
 0x468   : > { %v3036_v13 = vpop.f32.mrf.mxu1 }
 0x469   : > { %v2201_v54 = vadd.f32 %v3036_v13, %v4014_v17  ;;  %3049 = vmatprep.mubr.msk.bf16.mxu0 %vm714_vm0, %v2226_v3  ;;  %v2218_v28 = vadd.f32 %v2830_v24, %v2198_v5 }
 0x46a   : > { %v2174_v19 = vpop.f32.mrf.mxu1  ;;  %3050 = vmatmul.mubr.msk.bf16.gmra.mxu0 %vm714_vm0, %v2227_v53 }
 0x46b   : > { %v2199_v46 = vadd.f32 %v2174_v19, %v4021_v57  ;;  %v2221_v20 = vadd.f32 %v2830_v24, %v2201_v54 }
 0x46d   : > { %v2219_v14 = vadd.f32 %v2830_v24, %v2199_v46  ;;  %v2229_v21 = vpack.c.bf16 %v2221_v20, %v2220_v16 }
 0x46f   : > { %v2228_v0 = vpack.c.bf16 %v2219_v14, %v2218_v28 }
 0x471   : > { %3053 = vmatprep.mubr.msk.bf16.mxu0 %vm714_vm0, %v2228_v0 }
 0x472   : > { %3054 = vmatmul.mubr.msk.bf16.gmra.mxu0 %vm714_vm0, %v2229_v21 }
 0x519   : > { %v3043_v17 = vpop.f32.mrf.mxu0 }
 0x51a   : > { %v4077_v35 = vadd.f32 %v3043_v17, %v2831_v42 }
 0x51b   : > { %v2311_v33 = vpop.f32.mrf.mxu0 }
 0x51c   : > { %v4079_v57 = vadd.f32 %v2831_v42, %v2311_v33  ;;  %v2381_v58 = vsel %vm2374_vm1, %v4077_v35, -inf }
 0x51d   : > { %2382 = vmax.xlane.f32.xlu0 %v2381_v58  ;;  %v3044_v47 = vpop.f32.mrf.mxu0 }
 0x51e   : > { %v4083_v1 = vadd.f32 %v3044_v47, %v2831_v42  ;;  %v2375_v48 = vsel %vm2374_vm1, %v4079_v57, -inf }
 0x51f   : > { %v2314_v2 = vpop.f32.mrf.mxu0  ;;  %2376 = vmax.xlane.f32.xlu1 %v2375_v48 }
 0x520   : > { %v4087_v59 = vadd.f32 %v2831_v42, %v2314_v2  ;;  %v2384_v26 = vsel %vm2374_vm1, %v4083_v1, -inf }
 0x522   : > { %v3047_v8 = vpop.f32.mrf.mxu0  ;;  %v2378_v45 = vsel %vm2374_vm1, %v4087_v59, -inf }
 0x523   : > { %v4093_v24 = vadd.f32 %v3047_v8, %v2831_v42  ;;  %2379 = vmax.xlane.f32.xlu0 %v2378_v45  ;;  %2385 = vmax.xlane.f32.xlu1 %v2384_v26 }
 0x524   : > { %v2327_v56 = vpop.f32.mrf.mxu0 }
 0x525   : > { %v4095_v63 = vadd.f32 %v2831_v42, %v2327_v56  ;;  %v2393_v62 = vsel %vm2374_vm1, %v4093_v24, -inf }
 0x526   : > { %v3048_v41 = vpop.f32.mrf.mxu0 }
 0x527   : > { %v2339_v22 = vadd.f32 %v3048_v41, %v2831_v42  ;;  %2394 = vmax.xlane.f32.xlu0 %v2393_v62  ;;  %v2387_v29 = vsel %vm2374_vm1, %v4095_v63, -inf }
 0x528   : > { %v2330_v34 = vpop.f32.mrf.mxu0 }
 0x529   : > { %v4099_v51 = vadd.f32 %v2831_v42, %v2330_v34  ;;  %v2396_v25 = vsel %vm2374_vm1, %v2339_v22, -inf }
 0x52a   : > { %v3051_v36 = vpop.f32.mrf.mxu0  ;;  %2397 = vmax.xlane.f32.xlu1 %v2396_v25 }
 0x52b   : > { %v4104_v7 = vadd.f32 %v3051_v36, %v2831_v42  ;;  %2388 = vmax.xlane.f32.xlu0 %v2387_v29  ;;  %v2390_v38 = vsel %vm2374_vm1, %v4099_v51, -inf }
 0x52c   : > { %v2343_v37 = vpop.f32.mrf.mxu0 }
 0x52d   : > { %v4108_v15 = vadd.f32 %v2831_v42, %v2343_v37  ;;  %v2405_v6 = vsel %vm2374_vm1, %v4104_v7, -inf }
 0x52e   : > { %v3052_v31 = vpop.f32.mrf.mxu0  ;;  %2391 = vmax.xlane.f32.xlu1 %v2390_v38 }
 0x52f   : > { %v4112_v61 = vadd.f32 %v3052_v31, %v2831_v42  ;;  %2406 = vmax.xlane.f32.xlu0 %v2405_v6  ;;  %v2399_v43 = vsel %vm2374_vm1, %v4108_v15, -inf }
 0x530   : > { %v2346_v9 = vpop.f32.mrf.mxu0 }
 0x531   : > { %v4114_v18 = vadd.f32 %v2831_v42, %v2346_v9  ;;  %v2408_v55 = vsel %vm2374_vm1, %v4112_v61, -inf }
 0x532   : > { %2409 = vmax.xlane.f32.xlu1 %v2408_v55  ;;  %v3055_v50 = vpop.f32.mrf.mxu0 }
 0x533   : > { %2400 = vmax.xlane.f32.xlu0 %v2399_v43  ;;  %v2402_v4 = vsel %vm2374_vm1, %v4114_v18, -inf  ;;  %v4124_v39 = vadd.f32 %v3055_v50, %v2831_v42 }
 0x534   : > { %v2359_v12 = vpop.f32.mrf.mxu0 }
 0x535   : > { %v4120_v10 = vadd.f32 %v2831_v42, %v2359_v12  ;;  %v2417_v23 = vsel %vm2374_vm1, %v4124_v39, -inf }
 0x536   : > { %2403 = vmax.xlane.f32.xlu1 %v2402_v4  ;;  %v3056_v44 = vpop.f32.mrf.mxu0 }
 0x537   : > { %v2411_v52 = vsel %vm2374_vm1, %v4120_v10, -inf  ;;  %v4130_v30 = vadd.f32 %v3056_v44, %v2831_v42 }
 0x538   : > { %v2362_v27 = vpop.f32.mrf.mxu0  ;;  %2412 = vmax.xlane.f32.xlu0 %v2411_v52 }
 0x539   : > { %v4128_v49 = vadd.f32 %v2831_v42, %v2362_v27  ;;  %v2420_v11 = vsel %vm2374_vm1, %v4130_v30, -inf }
 0x53b   : > { %v2414_v60 = vsel %vm2374_vm1, %v4128_v49, -inf }
 0x53c   : > { %2415 = vmax.xlane.f32.xlu1 %v2414_v60  ;;  %2418 = vmax.xlane.f32.xlu0 %v2417_v23 }
 0x540   : > { %2421 = vmax.xlane.f32.xlu1 %v2420_v11 }
 0x5a6   : > { %v2383_v40 = vpop.xlane.xlu0 %2382 }
 0x5a7   : > { %v4139_v3 = vsub.f32 %v4077_v35, %v2383_v40 }
 0x5a8   : > { %v2377_v53 = vpop.xlane.xlu1 %2376 }
 0x5a9   : > { %v2443_v13 = vmul.f32 1.442695, %v4139_v3  ;;  %v4143_v5 = vsub.f32 %v4079_v57, %v2377_v53 }
 0x5ab   : > { %3169 = vpow2.f32 %v2443_v13  ;;  %v2439_v54 = vmul.f32 1.442695, %v4143_v5 }
 0x5ac   : > { %v2380_v32 = vpop.xlane.xlu0 %2379  ;;  %v2386_v19 = vpop.xlane.xlu1 %2385 }
 0x5ad   : > { %3171 = vpow2.f32 %v2439_v54  ;;  %v4147_v46 = vsub.f32 %v4087_v59, %v2380_v32  ;;  %v4150_v20 = vsub.f32 %v4083_v1, %v2386_v19 }
 0x5af   : > { %v2445_v28 = vmul.f32 1.442695, %v4150_v20  ;;  %v2441_v14 = vmul.f32 1.442695, %v4147_v46 }
 0x5b0   : > { %v2395_v16 = vpop.xlane.xlu0 %2394 }
 0x5b1   : > { %v4155_v0 = vsub.f32 %v4093_v24, %v2395_v16  ;;  %3173 = vpow2.f32 %v2445_v28 }
 0x5b2   : > { %3175 = vpow2.f32 %v2441_v14 }
 0x5b3   : > { %v2451_v21 = vmul.f32 1.442695, %v4155_v0  ;;  %v2398_v42 = vpop.xlane.xlu1 %2397 }
 0x5b4   : > { %v4158_v17 = vsub.f32 %v2339_v22, %v2398_v42  ;;  %v2389_v35 = vpop.xlane.xlu0 %2388 }
 0x5b5   : > { %3177 = vpow2.f32 %v2451_v21  ;;  %v4161_v33 = vsub.f32 %v4095_v63, %v2389_v35 }
 0x5b6   : > { %v2453_v57 = vmul.f32 1.442695, %v4158_v17 }
 0x5b7   : > { %v2447_v58 = vmul.f32 1.442695, %v4161_v33  ;;  %v2392_v47 = vpop.xlane.xlu1 %2391 }
 0x5b8   : > { %v3170_v1 = vpop.eup %3169  ;;  %3179 = vpow2.f32 %v2453_v57  ;;  %v4166_v48 = vsub.f32 %v4099_v51, %v2392_v47  ;;  %v2407_v2 = vpop.xlane.xlu0 %2406 }
 0x5b9   : > { %3181 = vpow2.f32 %v2447_v58  ;;  %v4169_v59 = vsub.f32 %v4104_v7, %v2407_v2  ;;  %v2477_v8 = vsel %vm2374_vm1, %v3170_v1, 0.0 }
 0x5ba   : > { %v3172_v45 = vpop.eup %3171  ;;  %v2449_v26 = vmul.f32 1.442695, %v4166_v48  ;;  %2478 = vadd.xlane.f32.xlu0 %v2477_v8 }
 0x5bb   : > { %v2459_v24 = vmul.f32 1.442695, %v4169_v59  ;;  %v2410_v56 = vpop.xlane.xlu1 %2409  ;;  %v2471_v22 = vsel %vm2374_vm1, %v3172_v45, 0.0 }
 0x5bc   : > { %3183 = vpow2.f32 %v2449_v26  ;;  %v4175_v63 = vsub.f32 %v4112_v61, %v2410_v56  ;;  %v2401_v41 = vpop.xlane.xlu0 %2400 }
 0x5bd   : > { %3185 = vpow2.f32 %v2459_v24  ;;  %v4178_v62 = vsub.f32 %v4108_v15, %v2401_v41 }
 0x5be   : > { %v2461_v34 = vmul.f32 1.442695, %v4175_v63  ;;  %2472 = vadd.xlane.f32.xlu0 %v2471_v22  ;;  %v3174_v51 = vpop.eup %3173 }
 0x5bf   : > { %v2455_v25 = vmul.f32 1.442695, %v4178_v62  ;;  %v2404_v36 = vpop.xlane.xlu1 %2403  ;;  %v2480_v7 = vsel %vm2374_vm1, %v3174_v51, 0.0  ;;  %v3176_v37 = vpop.eup %3175 }
 0x5c0   : > { %3187 = vpow2.f32 %v2461_v34  ;;  %v4184_v29 = vsub.f32 %v4114_v18, %v2404_v36  ;;  %2481 = vadd.xlane.f32.xlu1 %v2480_v7  ;;  %v2474_v18 = vsel %vm2374_vm1, %v3176_v37, 0.0 }
 0x5c1   : > { %3189 = vpow2.f32 %v2455_v25  ;;  %v2413_v38 = vpop.xlane.xlu0 %2412 }
 0x5c2   : > { %v3178_v15 = vpop.eup %3177  ;;  %v2457_v31 = vmul.f32 1.442695, %v4184_v29  ;;  %v4189_v6 = vsub.f32 %v4120_v10, %v2413_v38 }
 0x5c3   : > { %v2489_v61 = vsel %vm2374_vm1, %v3178_v15, 0.0 }
 0x5c4   : > { %3191 = vpow2.f32 %v2457_v31  ;;  %v2463_v9 = vmul.f32 1.442695, %v4189_v6  ;;  %2490 = vadd.xlane.f32.xlu0 %v2489_v61  ;;  %2475 = vadd.xlane.f32.xlu1 %v2474_v18 }
 0x5c5   : > { %v3180_v55 = vpop.eup %3179  ;;  %v2416_v50 = vpop.xlane.xlu1 %2415 }
 0x5c6   : > { %v2419_v43 = vpop.xlane.xlu0 %2418  ;;  %v3182_v12 = vpop.eup %3181  ;;  %3193 = vpow2.f32 %v2463_v9  ;;  %v4195_v4 = vsub.f32 %v4128_v49, %v2416_v50  ;;  %v2492_v60 = vsel %vm2374_vm1, %v3180_v55, 0.0 }
 0x5c7   : > { %v4198_v10 = vsub.f32 %v4124_v39, %v2419_v43  ;;  %v2483_v44 = vsel %vm2374_vm1, %v3182_v12, 0.0 }
 0x5c8   : > { %v2465_v52 = vmul.f32 1.442695, %v4195_v4  ;;  %2484 = vadd.xlane.f32.xlu0 %v2483_v44  ;;  %2493 = vadd.xlane.f32.xlu1 %v2492_v60 }
 0x5c9   : > { %v2467_v27 = vmul.f32 1.442695, %v4198_v10  ;;  %v3184_v23 = vpop.eup %3183  ;;  %v2422_v11 = vpop.xlane.xlu1 %2421 }
 0x5ca   : > { %v3186_v40 = vpop.eup %3185  ;;  %3195 = vpow2.f32 %v2465_v52  ;;  %v4205_v49 = vsub.f32 %v4130_v30, %v2422_v11  ;;  %v2486_v13 = vsel %vm2374_vm1, %v3184_v23, 0.0 }
 0x5cb   : > { %3197 = vpow2.f32 %v2467_v27  ;;  %v2501_v39 = vsel %vm2374_vm1, %v3186_v40, 0.0 }
 0x5cc   : > { %v2469_v53 = vmul.f32 1.442695, %v4205_v49  ;;  %2502 = vadd.xlane.f32.xlu0 %v2501_v39  ;;  %2487 = vadd.xlane.f32.xlu1 %v2486_v13 }
 0x5cd   : > { %v3188_v54 = vpop.eup %3187 }
 0x5ce   : > { %v3190_v32 = vpop.eup %3189  ;;  %3199 = vpow2.f32 %v2469_v53  ;;  %v2504_v28 = vsel %vm2374_vm1, %v3188_v54, 0.0 }
 0x5cf   : > { %v2495_v19 = vsel %vm2374_vm1, %v3190_v32, 0.0 }
 0x5d0   : > { %2496 = vadd.xlane.f32.xlu0 %v2495_v19  ;;  %2505 = vadd.xlane.f32.xlu1 %v2504_v28 }
 0x5d1   : > { %v3192_v14 = vpop.eup %3191 }
 0x5d2   : > { %v2498_v16 = vsel %vm2374_vm1, %v3192_v14, 0.0 }
 0x5d3   : > { %v3194_v30 = vpop.eup %3193 }
 0x5d4   : > { %v2507_v21 = vsel %vm2374_vm1, %v3194_v30, 0.0  ;;  %2499 = vadd.xlane.f32.xlu1 %v2498_v16 }
 0x5d5   : > { %2508 = vadd.xlane.f32.xlu0 %v2507_v21 }
 0x5d7   : > { %v3196_v42 = vpop.eup %3195 }
 0x5d8   : > { %v3198_v35 = vpop.eup %3197  ;;  %v2510_v57 = vsel %vm2374_vm1, %v3196_v42, 0.0 }
 0x5d9   : > { %2511 = vadd.xlane.f32.xlu1 %v2510_v57  ;;  %v2513_v58 = vsel %vm2374_vm1, %v3198_v35, 0.0 }
 0x5da   : > { %2514 = vadd.xlane.f32.xlu0 %v2513_v58 }
 0x5db   : > { %v3200_v47 = vpop.eup %3199 }
 0x5dc   : > { %v2516_v1 = vsel %vm2374_vm1, %v3200_v47, 0.0 }
 0x5dd   : > { %2517 = vadd.xlane.f32.xlu1 %v2516_v1 }
 0x643   : > { %v2479_v2 = vpop.xlane.xlu0 %2478 }
 0x644   : > { %3201 = vlog2.f32 %v2479_v2 }
 0x647   : > { %v2473_v8 = vpop.xlane.xlu0 %2472 }
 0x648   : > { %3203 = vlog2.f32 %v2473_v8 }
 0x649   : > { %v2482_v45 = vpop.xlane.xlu1 %2481 }
 0x64a   : > { %3205 = vlog2.f32 %v2482_v45 }
 0x64d   : > { %v2491_v26 = vpop.xlane.xlu0 %2490  ;;  %v2476_v24 = vpop.xlane.xlu1 %2475 }
 0x64e   : > { %3207 = vlog2.f32 %v2491_v26 }
 0x64f   : > { %3209 = vlog2.f32 %v2476_v24 }
 0x651   : > { %v3202_v56 = vpop.eup %3201  ;;  %v2485_v41 = vpop.xlane.xlu0 %2484 }
 0x652   : > { %v2524_v22 = vmul.f32 0.6931472, %v3202_v56  ;;  %v2494_v34 = vpop.xlane.xlu1 %2493  ;;  %3211 = vlog2.f32 %v2485_v41 }
 0x653   : > { %3213 = vlog2.f32 %v2494_v34 }
 0x654   : > { %v2553_v51 = vsub.f32 %v4139_v3, %v2524_v22 }
 0x655   : > { %v3204_v25 = vpop.eup %3203  ;;  %v2503_v36 = vpop.xlane.xlu0 %2502 }
 0x656   : > { %2569 = vst.msk [vmem:[%s4221_s20 + $0x10] sm:$0xff] %vm2374_vm1, %v2553_v51  ;;  %v2520_v7 = vmul.f32 0.6931472, %v3204_v25  ;;  %v2488_v37 = vpop.xlane.xlu1 %2487  ;;  %3215 = vlog2.f32 %v2503_v36 }
 0x657   : > { %3217 = vlog2.f32 %v2488_v37  ;;  %v3206_v38 = vpop.eup %3205 }
 0x658   : > { %v2551_v15 = vsub.f32 %v4143_v5, %v2520_v7  ;;  %v2526_v31 = vmul.f32 0.6931472, %v3206_v38 }
 0x659   : > { %v2497_v61 = vpop.xlane.xlu0 %2496 }
 0x65a   : > { %2567 = vst.msk [vmem:[%s4221_s20] sm:$0xff] %vm2374_vm1, %v2551_v15  ;;  %v2506_v9 = vpop.xlane.xlu1 %2505  ;;  %3219 = vlog2.f32 %v2497_v61  ;;  %v2554_v18 = vsub.f32 %v4150_v20, %v2526_v31 }
 0x65b   : > { %v3208_v3 = vpop.eup %3207  ;;  %3221 = vlog2.f32 %v2506_v9 }
 0x65c   : > { %v3210_v55 = vpop.eup %3209  ;;  %v2532_v50 = vmul.f32 0.6931472, %v3208_v3  ;;  %2570 = vst.msk [vmem:[%s4221_s20 + $0x18] sm:$0xff] %vm2374_vm1, %v2554_v18 }
 0x65d   : > { %v2522_v43 = vmul.f32 0.6931472, %v3210_v55 }
 0x65e   : > { %v2557_v12 = vsub.f32 %v4155_v0, %v2532_v50  ;;  %v2500_v5 = vpop.xlane.xlu1 %2499  ;;  %v2509_v44 = vpop.xlane.xlu0 %2508 }
 0x65f   : > { %v3212_v52 = vpop.eup %3211  ;;  %v2552_v27 = vsub.f32 %v4147_v46, %v2522_v43  ;;  %3223 = vlog2.f32 %v2500_v5 }
 0x660   : > { %v3214_v60 = vpop.eup %3213  ;;  %2573 = vst.msk [vmem:[%s4221_s20 + $0x30] sm:$0xff] %vm2374_vm1, %v2557_v12  ;;  %v2528_v20 = vmul.f32 0.6931472, %v3212_v52  ;;  %3225 = vlog2.f32 %v2509_v44 }
 0x661   : > { %2568 = vst.msk [vmem:[%s4221_s20 + $0x8] sm:$0xff] %vm2374_vm1, %v2552_v27  ;;  %v2534_v23 = vmul.f32 0.6931472, %v3214_v60 }
 0x662   : > { %v2555_v11 = vsub.f32 %v4161_v33, %v2528_v20  ;;  %v2512_v40 = vpop.xlane.xlu1 %2511 }
 0x663   : > { %v3216_v0 = vpop.eup %3215  ;;  %v2558_v39 = vsub.f32 %v4158_v17, %v2534_v23  ;;  %3227 = vlog2.f32 %v2512_v40  ;;  %v2515_v46 = vpop.xlane.xlu0 %2514 }
 0x664   : > { %v3218_v53 = vpop.eup %3217  ;;  %2571 = vst.msk [vmem:[%s4221_s20 + $0x20] sm:$0xff] %vm2374_vm1, %v2555_v11  ;;  %v2540_v13 = vmul.f32 0.6931472, %v3216_v0  ;;  %3229 = vlog2.f32 %v2515_v46 }
 0x665   : > { %2574 = vst.msk [vmem:[%s4221_s20 + $0x38] sm:$0xff] %vm2374_vm1, %v2558_v39  ;;  %v2530_v54 = vmul.f32 0.6931472, %v3218_v53 }
 0x666   : > { %v2561_v33 = vsub.f32 %v4169_v59, %v2540_v13  ;;  %v2518_v32 = vpop.xlane.xlu1 %2517 }
 0x667   : > { %v3220_v19 = vpop.eup %3219  ;;  %v2556_v28 = vsub.f32 %v4166_v48, %v2530_v54  ;;  %3231 = vlog2.f32 %v2518_v32 }
 0x668   : > { %v3222_v17 = vpop.eup %3221  ;;  %2577 = vst.msk [vmem:[%s4221_s20 + $0x50] sm:$0xff] %vm2374_vm1, %v2561_v33  ;;  %v2536_v14 = vmul.f32 0.6931472, %v3220_v19 }
 0x669   : > { %2572 = vst.msk [vmem:[%s4221_s20 + $0x28] sm:$0xff] %vm2374_vm1, %v2556_v28  ;;  %v2542_v30 = vmul.f32 0.6931472, %v3222_v17 }
 0x66a   : > { %v2559_v16 = vsub.f32 %v4178_v62, %v2536_v14 }
 0x66b   : > { %v2562_v21 = vsub.f32 %v4175_v63, %v2542_v30 }
 0x66c   : > { %v3224_v42 = vpop.eup %3223  ;;  %2575 = vst.msk [vmem:[%s4221_s20 + $0x40] sm:$0xff] %vm2374_vm1, %v2559_v16 }
 0x66d   : > { %v3226_v59 = vpop.eup %3225  ;;  %2578 = vst.msk [vmem:[%s4221_s20 + $0x58] sm:$0xff] %vm2374_vm1, %v2562_v21  ;;  %v2538_v48 = vmul.f32 0.6931472, %v3224_v42 }
 0x66e   : > { %v2544_v35 = vmul.f32 0.6931472, %v3226_v59 }
 0x66f   : > { %v2560_v57 = vsub.f32 %v4184_v29, %v2538_v48 }
 0x670   : > { %v3228_v58 = vpop.eup %3227  ;;  %v2563_v47 = vsub.f32 %v4189_v6, %v2544_v35 }
 0x671   : > { %v3230_v1 = vpop.eup %3229  ;;  %2576 = vst.msk [vmem:[%s4221_s20 + $0x48] sm:$0xff] %vm2374_vm1, %v2560_v57  ;;  %v2546_v63 = vmul.f32 0.6931472, %v3228_v58 }
 0x672   : > { %2579 = vst.msk [vmem:[%s4221_s20 + $0x60] sm:$0xff] %vm2374_vm1, %v2563_v47  ;;  %v2548_v62 = vmul.f32 0.6931472, %v3230_v1 }
 0x673   : > { %v2564_v2 = vsub.f32 %v4195_v4, %v2546_v63 }
 0x674   : > { %v3232_v8 = vpop.eup %3231  ;;  %v2565_v45 = vsub.f32 %v4198_v10, %v2548_v62 }
 0x675   : > { %2580 = vst.msk [vmem:[%s4221_s20 + $0x68] sm:$0xff] %vm2374_vm1, %v2564_v2  ;;  %v2550_v26 = vmul.f32 0.6931472, %v3232_v8 }
 0x676   : > { %2581 = vst.msk [vmem:[%s4221_s20 + $0x70] sm:$0xff] %vm2374_vm1, %v2565_v45 }
 0x677   : > { %v2566_v29 = vsub.f32 %v4205_v49, %v2550_v26 }
 0x679   : > { %2582 = vst.msk [vmem:[%s4221_s20 + $0x78] sm:$0xff] %vm2374_vm1, %v2566_v29 }
 0x67a PF: > { %s25_s22 = sadd.s32 1, %s3341_s22   ;;  %s4327_s17 = smov %s3325_s18 }
 0x67b   : > { %p22_p4 = scmp.ge.s32.totalorder %s25_s22, 4   ;;  %s4328_s18 = smov %s3329_s19 }
 0x67c   : > { %s4329_s19 = smov %s3487_s10  ;;  %s4330_s20 = smov %s3337_s21 }
 0x67d   : > { %s4331_s21 = smov %s4333_s30  ;;  %24 = sbr.rel (!%p22_p4) target bundleno = 10 (0xa), region = 125 }
 0x682   :  { %2616 = vsyncpa [#allocation3], 1 }
 0x683   :  { %2618 = vsyncpa [#allocation3 + $0x1], 1 }
 0x684   :  { %2619 = vsyncpa [#allocation5], 1 }

</bundles_post_ra>
